<compile_context>
chip_gen: v7x
topology: tpu7x:2x2x1
jax: 0.10.0
libtpu: 0.0.40
codegen_flags: <defaults>
</compile_context>

<pallas_src>
import jax
import jax.numpy as jnp
from jax.experimental import pallas as pl
from jax.experimental.pallas import tpu as pltpu


def _fused_kernel(w_ref, b_ref, x_ref, res_ref, o_ref):
    # w_ref:   (Cout, Cin)  BN-scale-folded 1x1 conv weight (grid-resident)
    # b_ref:   (Cout, 1)    folded BN bias = beta - mean * scale (resident)
    # x_ref:   (Cin,  tl)   activation tile, lanes = spatial positions
    # res_ref: (Cout, tl)   residual tile
    # o_ref:   (Cout, tl)   output tile (lane-dense, multiple of 128 lanes)
    y = jnp.dot(w_ref[...], x_ref[...], preferred_element_type=jnp.float32)
    y = y + b_ref[...] + res_ref[...].astype(jnp.float32)
    o_ref[...] = jnp.maximum(y, 0.0).astype(o_ref.dtype)


def conv_bn_add_relu(x_nchw, res_nchw, weight, gamma, beta, run_mean, run_var,
                     eps=1e-5, tl=1024, use_bf16=False, out_dtype=None,
                     alias_residual=False):
    """Fused 1x1-conv + BN(eval) + add + ReLU, NCHW in / NCHW out.

    tl:            spatial (H*W) lane tile, rounded down to a 128 multiple.
                   1024 is the default operating point (4 steps for the real
                   56x56 shape -> good v7x megacore occupancy); sweep to 2048.
    use_bf16:      cast x / weight / residual to bf16 (f32 MXU accumulate +
                   f32 epilogue).  Works on v5e too.
    out_dtype:     output dtype (default: x dtype).  bf16 output gives the
                   full ~2x HBM-byte reduction on this bandwidth-bound op.
    alias_residual: donate the residual buffer to the output
                   (requires matching dtypes); lowers peak HBM.
    """
    N, Cin, H, W = x_nchw.shape
    Cout = weight.shape[0]
    L = H * W
    out_dtype = jnp.dtype(out_dtype) if out_dtype is not None else x_nchw.dtype

    # Pure reshapes (no data movement): NCHW -> [N, C, H*W].
    x3 = x_nchw.reshape(N, Cin, L)
    r3 = res_nchw.reshape(N, Cout, L)

    # Fold eval-mode BN into the conv weight and a per-channel bias.
    scale = gamma * jax.lax.rsqrt(run_var + eps)              # (Cout,)
    w2 = weight.reshape(Cout, Cin) * scale[:, None]           # (Cout, Cin)
    bias = (beta - run_mean * scale).reshape(Cout, 1)         # (Cout, 1) f32

    if use_bf16:
        x3 = x3.astype(jnp.bfloat16)
        r3 = r3.astype(jnp.bfloat16)
        w2 = w2.astype(jnp.bfloat16)

    # Lane tile over the spatial dim: round user value down to a 128 multiple,
    # then clamp to the padded extent of L.  Ragged tails are handled by
    # pl.cdiv + masked edge blocks (each output column depends only on the
    # same input column, so padding lanes cannot contaminate valid results).
    tl = max(128, (int(tl) // 128) * 128)
    tl = min(tl, pl.cdiv(L, 128) * 128)
    grid = (N, pl.cdiv(L, tl))

    in_itm = 2 if use_bf16 else 4
    out_itm = jnp.dtype(out_dtype).itemsize

    cost = pl.CostEstimate(
        flops=2 * N * L * Cin * Cout,
        transcendentals=0,
        bytes_accessed=in_itm * (N * L * Cin + N * L * Cout + Cin * Cout)
        + out_itm * N * L * Cout + 4 * Cout,
    )

    # Per-step VMEM estimate (double-buffered streaming operands + constants).
    # Only override the scoped-VMEM limit when it would exceed v5e's 16 MiB
    # default; recommended tiles (f32 tl<=2048) stay under it on all chips.
    vmem_est = (2 * tl * (Cin * in_itm + Cout * in_itm + Cout * out_itm)
                + 4 * Cout * 128 * 4)
    vmem_limit = int(vmem_est + (2 << 20)) if vmem_est > (14 << 20) else None

    aliases = {}
    if alias_residual and r3.dtype == out_dtype:
        aliases = {3: 0}  # residual input -> output buffer

    def build(const_single_buffer):
        # Weight/bias block index never changes; single-buffer them to save
        # VMEM and pipeline bookkeeping.
        const_kw = (dict(pipeline_mode=pl.Buffered(1))
                    if const_single_buffer else {})
        return pl.pallas_call(
            _fused_kernel,
            out_shape=jax.ShapeDtypeStruct((N, Cout, L), out_dtype),
            grid_spec=pltpu.PrefetchScalarGridSpec(
                num_scalar_prefetch=0,
                grid=grid,
                in_specs=[
                    pl.BlockSpec((Cout, Cin), lambda n, j: (0, 0), **const_kw),
                    pl.BlockSpec((Cout, 1), lambda n, j: (0, 0), **const_kw),
                    pl.BlockSpec((None, Cin, tl), lambda n, j: (n, 0, j)),
                    pl.BlockSpec((None, Cout, tl), lambda n, j: (n, 0, j)),
                ],
                out_specs=pl.BlockSpec((None, Cout, tl), lambda n, j: (n, 0, j)),
            ),
            compiler_params=pltpu.CompilerParams(
                # Both grid axes are independent -> shard across megacore TCs.
                dimension_semantics=("parallel", "parallel"),
                vmem_limit_bytes=vmem_limit),
            cost_estimate=cost,
            input_output_aliases=aliases,
        )

    args = (w2, bias, x3, r3)
    try:
        out3 = build(True)(*args)
    except Exception:
        # Fallback if this Pallas version rejects Buffered(1) for constants.
        out3 = build(False)(*args)

    return out3.reshape(N, Cout, H, W)


if __name__ == "__main__":
    # Small shapes consistent with the module: 1x1 conv 64 -> 256 channels,
    # spatial shrunk 56x56 -> 14x14 (keeps H*W % 128 != 0, exercising the
    # masked edge-block path).
    N, Cin, Cout, H, W = 1, 64, 256, 14, 14

    key = jax.random.PRNGKey(0)
    k_x, k_res, k_w, k_g, k_b, k_m, k_v = jax.random.split(key, 7)

    x12 = jax.random.normal(k_x, (N, Cin, H, W), dtype=jnp.float32)
    x16 = jax.random.normal(k_res, (N, Cout, H, W), dtype=jnp.float32)

    weight = jax.random.normal(k_w, (Cout, Cin, 1, 1), dtype=jnp.float32) * 0.05
    gamma = 1.0 + 0.1 * jax.random.normal(k_g, (Cout,), dtype=jnp.float32)
    beta = 0.1 * jax.random.normal(k_b, (Cout,), dtype=jnp.float32)
    run_mean = 0.1 * jax.random.normal(k_m, (Cout,), dtype=jnp.float32)
    run_var = jnp.abs(jax.random.normal(k_v, (Cout,), dtype=jnp.float32)) + 0.5

    # Pure-JAX reference (eval-mode BN), no Pallas.
    x3 = x12.reshape(N, Cin, H * W)
    ref = jnp.einsum('oi,nil->nol', weight.reshape(Cout, Cin), x3)
    ref = (ref - run_mean[:, None]) * (
        gamma[:, None] / jnp.sqrt(run_var[:, None] + 1e-5)) + beta[:, None]
    ref = jnp.maximum(ref.reshape(N, Cout, H, W) + x16, 0.0)

    # f32 path (default): must match the reference tightly.
    out = conv_bn_add_relu(x12, x16, weight, gamma, beta, run_mean, run_var)
    jax.block_until_ready(out)
    assert out.shape == (N, Cout, H, W) and out.dtype == jnp.float32
    assert jnp.allclose(out, ref, atol=1e-4, rtol=1e-4), \
        float(jnp.max(jnp.abs(out - ref)))

    # bf16 streaming path with bf16 output (loose tolerance; ~2x fewer HBM
    # bytes on this bandwidth-bound op).
    out_bf16 = conv_bn_add_relu(x12, x16, weight, gamma, beta, run_mean,
                                run_var, use_bf16=True,
                                out_dtype=jnp.bfloat16)
    jax.block_until_ready(out_bf16)
    assert out_bf16.dtype == jnp.bfloat16
    assert jnp.allclose(out_bf16.astype(jnp.float32), ref,
                        atol=1e-1, rtol=1e-1)

    print("KERNEL_OK")
</pallas_src>

<mosaic_0001>
module attributes {stable_mosaic.version = 11 : i64} {
  func.func @_fused_kernel(%arg0: i32, %arg1: i32, %arg2: memref<256x64xf32, #tpu.memory_space<vmem>>, %arg3: memref<256x1xf32, #tpu.memory_space<vmem>>, %arg4: memref<1x64x256xf32, #tpu.memory_space<vmem>>, %arg5: memref<1x256x256xf32, #tpu.memory_space<vmem>>, %arg6: memref<1x256x256xf32, #tpu.memory_space<vmem>>) attributes {dimension_semantics = [#tpu.dimension_semantics<parallel>, #tpu.dimension_semantics<parallel>], iteration_bounds = array<i64: 1, 1>, scalar_prefetch = 0 : i64, scratch_operands = 0 : i64, tpu.core_type = #tpu.core_type<tc>, window_params = [{pipeline_mode = #tpu.pipeline_mode<synchronous>, transform_indices = @transform_0, window_bounds = array<i64: 256, 64>}, {pipeline_mode = #tpu.pipeline_mode<synchronous>, transform_indices = @transform_1, window_bounds = array<i64: 256, 1>}, {transform_indices = @transform_2, window_bounds = array<i64: 1, 64, 256>}, {transform_indices = @transform_3, window_bounds = array<i64: 1, 256, 256>}, {transform_indices = @transform_4, window_bounds = array<i64: 1, 256, 256>}]} {
    %c0 = arith.constant 0 : index
    %c0_0 = arith.constant 0 : index
    %0 = vector.load %arg2[%c0, %c0_0] : memref<256x64xf32, #tpu.memory_space<vmem>>, vector<256x64xf32>
    %c0_1 = arith.constant 0 : index
    %c0_2 = arith.constant 0 : index
    %c0_3 = arith.constant 0 : index
    %1 = vector.load %arg4[%c0_1, %c0_2, %c0_3] : memref<1x64x256xf32, #tpu.memory_space<vmem>>, vector<1x64x256xf32>
    %2 = vector.shape_cast %1 : vector<1x64x256xf32> to vector<64x256xf32>
    %cst = arith.constant dense<0.000000e+00> : vector<256x256xf32>
    %3 = tpu.matmul %0, %2, %cst {dimension_numbers = #tpu.dot_dimension_numbers<[1], [0], [0], [1], [0, 0, 1, 1], [], []>} : vector<256x64xf32>, vector<64x256xf32>, vector<256x256xf32> -> vector<256x256xf32>
    %c0_4 = arith.constant 0 : index
    %c0_5 = arith.constant 0 : index
    %4 = vector.load %arg3[%c0_4, %c0_5] : memref<256x1xf32, #tpu.memory_space<vmem>>, vector<256x1xf32>
    %5 = vector.broadcast %4 : vector<256x1xf32> to vector<256x256xf32>
    %6 = arith.addf %3, %5 : vector<256x256xf32>
    %c0_6 = arith.constant 0 : index
    %c0_7 = arith.constant 0 : index
    %c0_8 = arith.constant 0 : index
    %7 = vector.load %arg5[%c0_6, %c0_7, %c0_8] : memref<1x256x256xf32, #tpu.memory_space<vmem>>, vector<1x256x256xf32>
    %8 = vector.shape_cast %7 : vector<1x256x256xf32> to vector<256x256xf32>
    %9 = arith.addf %6, %8 : vector<256x256xf32>
    %cst_9 = arith.constant 0.000000e+00 : f32
    %10 = vector.broadcast %cst_9 : f32 to vector<256x256xf32>
    %11 = arith.maximumf %9, %10 : vector<256x256xf32>
    %c0_10 = arith.constant 0 : index
    %c0_11 = arith.constant 0 : index
    %c0_12 = arith.constant 0 : index
    %12 = vector.load %arg6[%c0_10, %c0_11, %c0_12] : memref<1x256x256xf32, #tpu.memory_space<vmem>>, vector<1x256x256xf32>
    %13 = vector.shape_cast %12 : vector<1x256x256xf32> to vector<256x256xf32>
    %14 = vector.shape_cast %11 : vector<256x256xf32> to vector<1x256x256xf32>
    tpu.vector_store %arg6[%c0_10, %c0_11, %c0_12], %14 {strides = array<i32>} : memref<1x256x256xf32, #tpu.memory_space<vmem>>, vector<1x256x256xf32>,
    return
  }
  func.func @transform_0(%arg0: i32, %arg1: i32) -> (i32, i32) {
    %c0_i32 = arith.constant 0 : i32
    %c0_i32_0 = arith.constant 0 : i32
    %c0_i32_1 = arith.constant 0 : i32
    return %c0_i32, %c0_i32_0 : i32, i32
  }
  func.func @transform_1(%arg0: i32, %arg1: i32) -> (i32, i32) {
    %c0_i32 = arith.constant 0 : i32
    %c0_i32_0 = arith.constant 0 : i32
    %c0_i32_1 = arith.constant 0 : i32
    return %c0_i32, %c0_i32_0 : i32, i32
  }
  func.func @transform_2(%arg0: i32, %arg1: i32) -> (i32, i32, i32) {
    %c0_i32 = arith.constant 0 : i32
    %c0_i32_0 = arith.constant 0 : i32
    return %arg0, %c0_i32, %arg1 : i32, i32, i32
  }
  func.func @transform_3(%arg0: i32, %arg1: i32) -> (i32, i32, i32) {
    %c0_i32 = arith.constant 0 : i32
    %c0_i32_0 = arith.constant 0 : i32
    return %arg0, %c0_i32, %arg1 : i32, i32, i32
  }
  func.func @transform_4(%arg0: i32, %arg1: i32) -> (i32, i32, i32) {
    %c0_i32 = arith.constant 0 : i32
    %c0_i32_0 = arith.constant 0 : i32
    return %arg0, %c0_i32, %arg1 : i32, i32, i32
  }
}

module attributes {stable_mosaic.version = 11 : i64} {
  func.func @_fused_kernel(%arg0: i32, %arg1: i32, %arg2: memref<256x64xf32, #tpu.memory_space<vmem>>, %arg3: memref<256x1xf32, #tpu.memory_space<vmem>>, %arg4: memref<1x64x256xf32, #tpu.memory_space<vmem>>, %arg5: memref<1x256x256xf32, #tpu.memory_space<vmem>>, %arg6: memref<1x256x256xf32, #tpu.memory_space<vmem>>) attributes {dimension_semantics = [#tpu.dimension_semantics<parallel>, #tpu.dimension_semantics<parallel>], iteration_bounds = array<i64: 1, 1>, scalar_prefetch = 0 : i64, scratch_operands = 0 : i64, tpu.core_type = #tpu.core_type<tc>, window_params = [{pipeline_mode = #tpu.pipeline_mode<synchronous>, transform_indices = @transform_0, window_bounds = array<i64: 256, 64>}, {pipeline_mode = #tpu.pipeline_mode<synchronous>, transform_indices = @transform_1, window_bounds = array<i64: 256, 1>}, {transform_indices = @transform_2, window_bounds = array<i64: 1, 64, 256>}, {transform_indices = @transform_3, window_bounds = array<i64: 1, 256, 256>}, {transform_indices = @transform_4, window_bounds = array<i64: 1, 256, 256>}]} {
    %c0 = arith.constant 0 : index
    %c0_0 = arith.constant 0 : index
    %0 = vector.load %arg2[%c0, %c0_0] : memref<256x64xf32, #tpu.memory_space<vmem>>, vector<256x64xf32>
    %c0_1 = arith.constant 0 : index
    %c0_2 = arith.constant 0 : index
    %c0_3 = arith.constant 0 : index
    %1 = vector.load %arg4[%c0_1, %c0_2, %c0_3] : memref<1x64x256xf32, #tpu.memory_space<vmem>>, vector<1x64x256xf32>
    %2 = vector.shape_cast %1 : vector<1x64x256xf32> to vector<64x256xf32>
    %cst = arith.constant dense<0.000000e+00> : vector<256x256xf32>
    %3 = tpu.matmul %0, %2, %cst {dimension_numbers = #tpu.dot_dimension_numbers<[1], [0], [0], [1], [0, 0, 1, 1], [], []>} : vector<256x64xf32>, vector<64x256xf32>, vector<256x256xf32> -> vector<256x256xf32>
    %c0_4 = arith.constant 0 : index
    %c0_5 = arith.constant 0 : index
    %4 = vector.load %arg3[%c0_4, %c0_5] : memref<256x1xf32, #tpu.memory_space<vmem>>, vector<256x1xf32>
    %5 = vector.broadcast %4 : vector<256x1xf32> to vector<256x256xf32>
    %6 = arith.addf %3, %5 : vector<256x256xf32>
    %c0_6 = arith.constant 0 : index
    %c0_7 = arith.constant 0 : index
    %c0_8 = arith.constant 0 : index
    %7 = vector.load %arg5[%c0_6, %c0_7, %c0_8] : memref<1x256x256xf32, #tpu.memory_space<vmem>>, vector<1x256x256xf32>
    %8 = vector.shape_cast %7 : vector<1x256x256xf32> to vector<256x256xf32>
    %9 = arith.addf %6, %8 : vector<256x256xf32>
    %cst_9 = arith.constant 0.000000e+00 : f32
    %10 = vector.broadcast %cst_9 : f32 to vector<256x256xf32>
    %11 = arith.maximumf %9, %10 : vector<256x256xf32>
    %c0_10 = arith.constant 0 : index
    %c0_11 = arith.constant 0 : index
    %c0_12 = arith.constant 0 : index
    %12 = vector.load %arg6[%c0_10, %c0_11, %c0_12] : memref<1x256x256xf32, #tpu.memory_space<vmem>>, vector<1x256x256xf32>
    %13 = vector.shape_cast %12 : vector<1x256x256xf32> to vector<256x256xf32>
    %14 = vector.shape_cast %11 : vector<256x256xf32> to vector<1x256x256xf32>
    tpu.vector_store %arg6[%c0_10, %c0_11, %c0_12], %14 {strides = array<i32>} : memref<1x256x256xf32, #tpu.memory_space<vmem>>, vector<1x256x256xf32>,
    return
  }
  func.func @transform_0(%arg0: i32, %arg1: i32) -> (i32, i32) {
    %c0_i32 = arith.constant 0 : i32
    %c0_i32_0 = arith.constant 0 : i32
    %c0_i32_1 = arith.constant 0 : i32
    return %c0_i32, %c0_i32_0 : i32, i32
  }
  func.func @transform_1(%arg0: i32, %arg1: i32) -> (i32, i32) {
    %c0_i32 = arith.constant 0 : i32
    %c0_i32_0 = arith.constant 0 : i32
    %c0_i32_1 = arith.constant 0 : i32
    return %c0_i32, %c0_i32_0 : i32, i32
  }
  func.func @transform_2(%arg0: i32, %arg1: i32) -> (i32, i32, i32) {
    %c0_i32 = arith.constant 0 : i32
    %c0_i32_0 = arith.constant 0 : i32
    return %arg0, %c0_i32, %arg1 : i32, i32, i32
  }
  func.func @transform_3(%arg0: i32, %arg1: i32) -> (i32, i32, i32) {
    %c0_i32 = arith.constant 0 : i32
    %c0_i32_0 = arith.constant 0 : i32
    return %arg0, %c0_i32, %arg1 : i32, i32, i32
  }
  func.func @transform_4(%arg0: i32, %arg1: i32) -> (i32, i32, i32) {
    %c0_i32 = arith.constant 0 : i32
    %c0_i32_0 = arith.constant 0 : i32
    return %arg0, %c0_i32, %arg1 : i32, i32, i32
  }
}

</mosaic_0001>

<bundles_post_ra>
// kernel: tpu_custom_call.1
= control target key start
LH: loop header
LB: loop body
LE: loop exit
PB: predicated region body
PF: predicated region fallthrough
CT: control target
= control target key end

     0   :  { %v931_v3 = vmov 0.0   ;;  %v932_v8 = vmov 0   ;;  %vm257_vm0 = vcmask 523264   ;;  %s1702_s2 = inlined_call_operand.vmem [shape: f32[1,64,196], index: 2, kind: input, shape index: {}]   ;;  %s1703_s1 = inlined_call_operand.vmem [shape: f32[256,1], index: 1, kind: input, shape index: {}]   ;;  %s1704_s0 = inlined_call_operand.vmem [shape: f32[256,64], index: 0, kind: input, shape index: {}]   ;;  %s1705_s3 = inlined_call_operand.vmem [shape: f32[1,256,196], index: 3, kind: input, shape index: {}]   ;;  %s1706_s4 = inlined_call_operand.vmem [shape: f32[1,256,196], index: 4, kind: output, shape index: {}]  }
   0x1   :  { %v50_v0 = vld [vmem:[%s1702_s2 + $0x8] sm:$0xff]  ;;  %v52_v1 = vld [vmem:[%s1702_s2 + $0x18] sm:$0xff]  ;;  %v49_v2 = vld [vmem:[%s1702_s2] sm:$0xff]  ;;  %418 = vmatprep.mubr.f32.mxu0 %v931_v3  ;;  %514 = vmatprep.mubr.f32.mxu1 %v931_v3 }
   0x2   :  { %v903_v4 = vpack.c.bf16 %v52_v1, %v50_v0  ;;  %v51_v5 = vld [vmem:[%s1702_s2 + $0x10] sm:$0xff]  ;;  %v54_v6 = vld [vmem:[%s1702_s2 + $0x28] sm:$0xff]  ;;  %v56_v7 = vld [vmem:[%s1702_s2 + $0x38] sm:$0xff]  ;;  %930 = vset.pattern.permute.xlu1 %v932_v8  ;;  %929 = vset.pattern.permute.xlu0 %v932_v8 }
   0x3   :  { %v905_v9 = vpack.c.bf16 %v51_v5, %v49_v2  ;;  %v907_v10 = vpack.c.bf16 %v56_v7, %v54_v6  ;;  %v53_v11 = vld [vmem:[%s1702_s2 + $0x20] sm:$0xff]  ;;  %v55_v12 = vld [vmem:[%s1702_s2 + $0x30] sm:$0xff]  ;;  %v58_v13 = vld [vmem:[%s1702_s2 + $0x48] sm:$0xff] }
   0x4   :  { %904 = vmatprep.subr.bf16.mxu0 %v903_v4  ;;  %919 = vmatprep.subr.bf16.mxu1 %v903_v4  ;;  %v60_v14 = vld [vmem:[%s1702_s2 + $0x58] sm:$0xff]  ;;  %v909_v15 = vpack.c.bf16 %v55_v12, %v53_v11  ;;  %v57_v17 = vld [vmem:[%s1702_s2 + $0x40] sm:$0xff]  ;;  %v59_v18 = vld [vmem:[%s1702_s2 + $0x50] sm:$0xff] }
   0x5   :  { %906 = vmatpush1.bf16.msra.mxu0 %v905_v9  ;;  %923 = vmatpush1.bf16.msra.mxu1 %v905_v9  ;;  %v911_v16 = vpack.c.bf16 %v60_v14, %v58_v13  ;;  %v62_v19 = vld [vmem:[%s1702_s2 + $0x68] sm:$0xff]  ;;  %v64_v20 = vld [vmem:[%s1702_s2 + $0x78] sm:$0xff]  ;;  %v913_v21 = vpack.c.bf16 %v59_v18, %v57_v17  ;;  %v61_v23 = vld [vmem:[%s1702_s2 + $0x60] sm:$0xff] }
   0x6   :  { %908 = vmatprep.subr.bf16.mxu0 %v907_v10  ;;  %920 = vmatprep.subr.bf16.mxu1 %v907_v10  ;;  %v915_v22 = vpack.c.bf16 %v64_v20, %v62_v19  ;;  %v63_v24 = vld [vmem:[%s1702_s2 + $0x70] sm:$0xff]  ;;  %v65_v26 = vld [vmem:[%s1703_s1] sm:$0xff]  ;;  %v68_v28 = vld [vmem:[%s1703_s1 + $0x18] sm:$0xff] }
   0x7   :  { %v67_v25 = vld [vmem:[%s1703_s1 + $0x10] sm:$0xff]  ;;  %99 = vperm.xlu0 %929, %v65_v26   ;;  %v917_v27 = vpack.c.bf16 %v63_v24, %v61_v23  ;;  %v66_v29 = vld [vmem:[%s1703_s1 + $0x8] sm:$0xff]  ;;  %v17_v30 = vld [vmem:[%s1704_s0] sm:$0xff] }
   0x8   :  { %109 = vperm.xlu1 %930, %v67_v25   ;;  %v33_v31 = vld [vmem:[%s1704_s0 + $0x80] sm:$0xff]  ;;  %v70_v32 = vld [vmem:[%s1703_s1 + $0x28] sm:$0xff]  ;;  %v72_v36 = vld [vmem:[%s1703_s1 + $0x38] sm:$0xff] }
   0x9   :  { %910 = vmatpush1.bf16.msra.mxu0 %v909_v15  ;;  %924 = vmatpush1.bf16.msra.mxu1 %v909_v15  ;;  %v69_v33 = vld [vmem:[%s1703_s1 + $0x20] sm:$0xff]  ;;  %v18_v34 = vld [vmem:[%s1704_s0 + $0x8] sm:$0xff]  ;;  %v71_v37 = vld [vmem:[%s1703_s1 + $0x30] sm:$0xff] }
   0xa   :  { %912 = vmatprep.subr.bf16.mxu0 %v911_v16  ;;  %921 = vmatprep.subr.bf16.mxu1 %v911_v16  ;;  %v34_v35 = vld [vmem:[%s1704_s0 + $0x88] sm:$0xff]  ;;  %v19_v38 = vld [vmem:[%s1704_s0 + $0x10] sm:$0xff]  ;;  %v73_v41 = vld [vmem:[%s1703_s1 + $0x40] sm:$0xff] }
   0xb   :  { %104 = vperm.xlu0 %929, %v66_v29   ;;  %v35_v39 = vld [vmem:[%s1704_s0 + $0x90] sm:$0xff]  ;;  %v74_v40 = vld [vmem:[%s1703_s1 + $0x48] sm:$0xff]  ;;  %v20_v42 = vld [vmem:[%s1704_s0 + $0x18] sm:$0xff] }
   0xc   :  { %114 = vperm.xlu1 %930, %v68_v28   ;;  %v36_v43 = vld [vmem:[%s1704_s0 + $0x98] sm:$0xff]  ;;  %v75_v45 = vld [vmem:[%s1703_s1 + $0x50] sm:$0xff]  ;;  %v21_v46 = vld [vmem:[%s1704_s0 + $0x20] sm:$0xff] }
   0xd   :  { %914 = vmatpush1.bf16.msra.mxu0 %v913_v21  ;;  %925 = vmatpush1.bf16.msra.mxu1 %v913_v21  ;;  %v76_v44 = vld [vmem:[%s1703_s1 + $0x58] sm:$0xff]  ;;  %v37_v47 = vld [vmem:[%s1704_s0 + $0xa0] sm:$0xff]  ;;  %v78_v48 = vld [vmem:[%s1703_s1 + $0x68] sm:$0xff] }
   0xe   :  { %916 = vmatprep.subr.bf16.mxu0 %v915_v22  ;;  %922 = vmatprep.subr.bf16.mxu1 %v915_v22  ;;  %v77_v49 = vld [vmem:[%s1703_s1 + $0x60] sm:$0xff]  ;;  %v22_v50 = vld [vmem:[%s1704_s0 + $0x28] sm:$0xff]  ;;  %v80_v52 = vld [vmem:[%s1703_s1 + $0x78] sm:$0xff] }
   0xf   :  { %119 = vperm.xlu0 %929, %v69_v33   ;;  %v38_v51 = vld [vmem:[%s1704_s0 + $0xa8] sm:$0xff]  ;;  %v79_v53 = vld [vmem:[%s1703_s1 + $0x70] sm:$0xff]  ;;  %v81_v57 = vld [vmem:[%s1703_s1 + $0x80] sm:$0xff] }
  0x10   :  { %124 = vperm.xlu1 %930, %v70_v32   ;;  %v23_v54 = vld [vmem:[%s1704_s0 + $0x30] sm:$0xff]  ;;  %v82_v56 = vld [vmem:[%s1703_s1 + $0x88] sm:$0xff]  ;;  %v24_v58 = vld [vmem:[%s1704_s0 + $0x38] sm:$0xff] }
  0x11   :  { %918 = vmatpush1.bf16.msra.mxu0 %v917_v27  ;;  %926 = vmatpush1.bf16.msra.mxu1 %v917_v27  ;;  %v39_v55 = vld [vmem:[%s1704_s0 + $0xb0] sm:$0xff]  ;;  %v40_v59 = vld [vmem:[%s1704_s0 + $0xb8] sm:$0xff]  ;;  %v25_v62 = vld [vmem:[%s1704_s0 + $0x40] sm:$0xff] }
  0x12   :  { %v84_v60 = vld [vmem:[%s1703_s1 + $0x98] sm:$0xff]  ;;  %v83_v61 = vld [vmem:[%s1703_s1 + $0x90] sm:$0xff]  ;;  %v41_v63 = vld [vmem:[%s1704_s0 + $0xc0] sm:$0xff] }
  0x13   :  { %129 = vperm.xlu0 %929, %v71_v37   ;;  %v86_v0 = vld [vmem:[%s1703_s1 + $0xa8] sm:$0xff]  ;;  %v85_v1 = vld [vmem:[%s1703_s1 + $0xa0] sm:$0xff]  ;;  %v88_v5 = vld [vmem:[%s1703_s1 + $0xb8] sm:$0xff] }
  0x14   :  { %871 = vmatmul.mubr.msk.f32.vlgmr.msra.gmra.mrb[0].mxu0 %vm257_vm0, %v17_v30  ;;  %887 = vmatmul.mubr.msk.f32.vlgmr.msra.gmra.mrb[0].mxu1 %vm257_vm0, %v33_v31  ;;  %v26_v2 = vld [vmem:[%s1704_s0 + $0x48] sm:$0xff]  ;;  %v87_v6 = vld [vmem:[%s1703_s1 + $0xb0] sm:$0xff]  ;;  %v89_v10 = vld [vmem:[%s1703_s1 + $0xc0] sm:$0xff] }
  0x15   :  { %424 = vmatprep.mubr.f32.mxu0 %v931_v3  ;;  %520 = vmatprep.mubr.f32.mxu1 %v931_v3  ;;  %v42_v4 = vld [vmem:[%s1704_s0 + $0xc8] sm:$0xff]  ;;  %v27_v7 = vld [vmem:[%s1704_s0 + $0x50] sm:$0xff]  ;;  %v28_v11 = vld [vmem:[%s1704_s0 + $0x58] sm:$0xff] }
  0x16   :  { %134 = vperm.xlu1 %930, %v72_v36   ;;  %v43_v8 = vld [vmem:[%s1704_s0 + $0xd0] sm:$0xff]  ;;  %v90_v9 = vld [vmem:[%s1703_s1 + $0xc8] sm:$0xff]  ;;  %v44_v12 = vld [vmem:[%s1704_s0 + $0xd8] sm:$0xff] }
  0x17   :  { %139 = vperm.xlu0 %929, %v73_v41   ;;  %v92_v13 = vld [vmem:[%s1703_s1 + $0xd8] sm:$0xff]  ;;  %v91_v14 = vld [vmem:[%s1703_s1 + $0xd0] sm:$0xff]  ;;  %v29_v15 = vld [vmem:[%s1704_s0 + $0x60] sm:$0xff] }
  0x18   :  { %872 = vmatmul.mubr.msk.f32.gmra.mrb[2].mxu0 %vm257_vm0, %v18_v34  ;;  %888 = vmatmul.mubr.msk.f32.gmra.mrb[2].mxu1 %vm257_vm0, %v34_v35  ;;  %v45_v16 = vld [vmem:[%s1704_s0 + $0xe0] sm:$0xff]  ;;  %v94_v17 = vld [vmem:[%s1703_s1 + $0xe8] sm:$0xff]  ;;  %v96_v21 = vld [vmem:[%s1703_s1 + $0xf8] sm:$0xff] }
  0x19   :  { %430 = vmatprep.mubr.f32.mxu0 %v931_v3  ;;  %526 = vmatprep.mubr.f32.mxu1 %v931_v3  ;;  %v93_v18 = vld [vmem:[%s1703_s1 + $0xe0] sm:$0xff]  ;;  %v30_v19 = vld [vmem:[%s1704_s0 + $0x68] sm:$0xff]  ;;  %v95_v22 = vld [vmem:[%s1703_s1 + $0xf0] sm:$0xff] }
  0x1a   :  { %144 = vperm.xlu1 %930, %v74_v40   ;;  %v46_v20 = vld [vmem:[%s1704_s0 + $0xe8] sm:$0xff]  ;;  %v31_v23 = vld [vmem:[%s1704_s0 + $0x70] sm:$0xff]  ;;  %v32_v25 = vld [vmem:[%s1704_s0 + $0x78] sm:$0xff] }
  0x1b   :  { %149 = vperm.xlu0 %929, %v75_v45   ;;  %v47_v24 = vld [vmem:[%s1704_s0 + $0xf0] sm:$0xff]  ;;  %v48_v26 = vld [vmem:[%s1704_s0 + $0xf8] sm:$0xff] }
  0x1c   :  { %873 = vmatmul.mubr.msk.f32.gmra.mrb[4].mxu0 %vm257_vm0, %v19_v38  ;;  %889 = vmatmul.mubr.msk.f32.gmra.mrb[4].mxu1 %vm257_vm0, %v35_v39 }
  0x1d   :  { %436 = vmatprep.mubr.f32.mxu0 %v931_v3  ;;  %532 = vmatprep.mubr.f32.mxu1 %v931_v3 }
  0x1e   :  { %154 = vperm.xlu1 %930, %v76_v44   ;;  %v611_v44 = vld [vmem:[%s1705_s3] sm:$0xff] }
  0x1f   :  { %159 = vperm.xlu0 %929, %v77_v49  }
  0x20   :  { %874 = vmatmul.mubr.msk.f32.gmra.mrb[6].mxu0 %vm257_vm0, %v20_v42  ;;  %890 = vmatmul.mubr.msk.f32.gmra.mrb[6].mxu1 %vm257_vm0, %v36_v43 }
  0x21   :  { %442 = vmatprep.mubr.f32.mxu0 %v931_v3  ;;  %538 = vmatprep.mubr.f32.mxu1 %v931_v3 }
  0x22   :  { %164 = vperm.xlu1 %930, %v78_v48  }
  0x23   :  { %169 = vperm.xlu0 %929, %v79_v53  }
  0x24   :  { %875 = vmatmul.mubr.msk.f32.gmra.mrb[8].mxu0 %vm257_vm0, %v21_v46  ;;  %891 = vmatmul.mubr.msk.f32.gmra.mrb[8].mxu1 %vm257_vm0, %v37_v47  ;;  %v643_v46 = vld [vmem:[%s1705_s3 + $0x100] sm:$0xff] }
  0x25   :  { %448 = vmatprep.mubr.f32.mxu0 %v931_v3  ;;  %544 = vmatprep.mubr.f32.mxu1 %v931_v3 }
  0x26   :  { %174 = vperm.xlu1 %930, %v80_v52   ;;  %v644_v52 = vld [vmem:[%s1705_s3 + $0x108] sm:$0xff] }
  0x27   :  { %179 = vperm.xlu0 %929, %v81_v57  }
  0x28   :  { %876 = vmatmul.mubr.msk.f32.gmra.mrb[10].mxu0 %vm257_vm0, %v22_v50  ;;  %892 = vmatmul.mubr.msk.f32.gmra.mrb[10].mxu1 %vm257_vm0, %v38_v51  ;;  %v612_v50 = vld [vmem:[%s1705_s3 + $0x8] sm:$0xff] }
  0x29   :  { %454 = vmatprep.mubr.f32.mxu0 %v931_v3  ;;  %550 = vmatprep.mubr.f32.mxu1 %v931_v3 }
  0x2a   :  { %184 = vperm.xlu1 %930, %v82_v56  }
  0x2b   :  { %189 = vperm.xlu0 %929, %v83_v61   ;;  %v613_v61 = vld [vmem:[%s1705_s3 + $0x10] sm:$0xff] }
  0x2c   :  { %877 = vmatmul.mubr.msk.f32.gmra.mrb[12].mxu0 %vm257_vm0, %v23_v54  ;;  %893 = vmatmul.mubr.msk.f32.gmra.mrb[12].mxu1 %vm257_vm0, %v39_v55 }
  0x2d   :  { %460 = vmatprep.mubr.f32.mxu0 %v931_v3  ;;  %556 = vmatprep.mubr.f32.mxu1 %v931_v3 }
  0x2e   :  { %194 = vperm.xlu1 %930, %v84_v60  }
  0x2f   :  { %199 = vperm.xlu0 %929, %v85_v1  }
  0x30   :  { %878 = vmatmul.mubr.msk.f32.gmra.mrb[14].mxu0 %vm257_vm0, %v24_v58  ;;  %894 = vmatmul.mubr.msk.f32.gmra.mrb[14].mxu1 %vm257_vm0, %v40_v59 }
  0x31   :  { %466 = vmatprep.mubr.f32.mxu0 %v931_v3  ;;  %562 = vmatprep.mubr.f32.mxu1 %v931_v3 }
  0x32   :  { %204 = vperm.xlu1 %930, %v86_v0  }
  0x33   :  { %209 = vperm.xlu0 %929, %v87_v6   ;;  %v614_v6 = vld [vmem:[%s1705_s3 + $0x18] sm:$0xff] }
  0x34   :  { %879 = vmatmul.mubr.msk.f32.gmra.mrb[16].mxu0 %vm257_vm0, %v25_v62  ;;  %895 = vmatmul.mubr.msk.f32.gmra.mrb[16].mxu1 %vm257_vm0, %v41_v63  ;;  %v645_v63 = vld [vmem:[%s1705_s3 + $0x110] sm:$0xff] }
  0x35   :  { %472 = vmatprep.mubr.f32.mxu0 %v931_v3  ;;  %568 = vmatprep.mubr.f32.mxu1 %v931_v3 }
  0x36   :  { %214 = vperm.xlu1 %930, %v88_v5  }
  0x37   :  { %219 = vperm.xlu0 %929, %v89_v10  }
  0x38   :  { %880 = vmatmul.mubr.msk.f32.gmra.mrb[18].mxu0 %vm257_vm0, %v26_v2  ;;  %896 = vmatmul.mubr.msk.f32.gmra.mrb[18].mxu1 %vm257_vm0, %v42_v4 }
  0x39   :  { %478 = vmatprep.mubr.f32.mxu0 %v931_v3  ;;  %574 = vmatprep.mubr.f32.mxu1 %v931_v3 }
  0x3a   :  { %224 = vperm.xlu1 %930, %v90_v9  }
  0x3b   :  { %229 = vperm.xlu0 %929, %v91_v14  }
  0x3c   :  { %881 = vmatmul.mubr.msk.f32.gmra.mrb[20].mxu0 %vm257_vm0, %v27_v7  ;;  %897 = vmatmul.mubr.msk.f32.gmra.mrb[20].mxu1 %vm257_vm0, %v43_v8  ;;  %v646_v8 = vld [vmem:[%s1705_s3 + $0x118] sm:$0xff] }
  0x3d   :  { %484 = vmatprep.mubr.f32.mxu0 %v931_v3  ;;  %580 = vmatprep.mubr.f32.mxu1 %v931_v3 }
  0x3e   :  { %234 = vperm.xlu1 %930, %v92_v13  }
  0x3f   :  { %239 = vperm.xlu0 %929, %v93_v18  }
  0x40   :  { %882 = vmatmul.mubr.msk.f32.gmra.mrb[22].mxu0 %vm257_vm0, %v28_v11  ;;  %898 = vmatmul.mubr.msk.f32.gmra.mrb[22].mxu1 %vm257_vm0, %v44_v12 }
  0x41   :  { %490 = vmatprep.mubr.f32.mxu0 %v931_v3  ;;  %586 = vmatprep.mubr.f32.mxu1 %v931_v3 }
  0x42   :  { %244 = vperm.xlu1 %930, %v94_v17  }
  0x43   :  { %249 = vperm.xlu0 %929, %v95_v22  }
  0x44   :  { %883 = vmatmul.mubr.msk.f32.gmra.mrb[24].mxu0 %vm257_vm0, %v29_v15  ;;  %899 = vmatmul.mubr.msk.f32.gmra.mrb[24].mxu1 %vm257_vm0, %v45_v16 }
  0x45   :  { %496 = vmatprep.mubr.f32.mxu0 %v931_v3  ;;  %592 = vmatprep.mubr.f32.mxu1 %v931_v3 }
  0x46   :  { %254 = vperm.xlu1 %930, %v96_v21   ;;  %v647_v21 = vld [vmem:[%s1705_s3 + $0x120] sm:$0xff] }
  0x48   :  { %884 = vmatmul.mubr.msk.f32.gmra.mrb[26].mxu0 %vm257_vm0, %v30_v19  ;;  %900 = vmatmul.mubr.msk.f32.gmra.mrb[26].mxu1 %vm257_vm0, %v46_v20  ;;  %v615_v19 = vld [vmem:[%s1705_s3 + $0x20] sm:$0xff] }
  0x49   :  { %502 = vmatprep.mubr.f32.mxu0 %v931_v3  ;;  %598 = vmatprep.mubr.f32.mxu1 %v931_v3 }
  0x4c   :  { %885 = vmatmul.mubr.msk.f32.gmra.mrb[28].mxu0 %vm257_vm0, %v31_v23  ;;  %901 = vmatmul.mubr.msk.f32.gmra.mrb[28].mxu1 %vm257_vm0, %v47_v24 }
  0x4d   :  { %508 = vmatprep.mubr.f32.mxu0 %v931_v3  ;;  %604 = vmatprep.mubr.f32.mxu1 %v931_v3 }
  0x50   :  { %886 = vmatmul.mubr.msk.f32.gmra.mrb[30].mxu0 %vm257_vm0, %v32_v25  ;;  %902 = vmatmul.mubr.msk.f32.gmra.mrb[30].mxu1 %vm257_vm0, %v48_v26 }
  0x86   :  { %v100_v27 = vpop.permute.xlu0 %99 }
  0x87   :  { %v1262_v28 = vpop.permute.xlu1 %109 }
  0x8a   :  { %v105_v29 = vpop.permute.xlu0 %104 }
  0x8b   :  { %v1264_v30 = vpop.permute.xlu1 %114 }
  0x8e   :  { %v1266_v31 = vpop.permute.xlu0 %119 }
  0x8f   :  { %v1268_v3 = vpop.permute.xlu1 %124 }
  0x92   :  { %v1270_v32 = vpop.permute.xlu0 %129 }
  0x95   :  { %v1272_v33 = vpop.permute.xlu1 %134 }
  0x96   :  { %v1274_v34 = vpop.permute.xlu0 %139 }
  0x99   :  { %v1276_v35 = vpop.permute.xlu1 %144 }
  0x9a   :  { %v1278_v36 = vpop.permute.xlu0 %149 }
  0x9d   :  { %v1280_v37 = vpop.permute.xlu1 %154 }
  0x9e   :  { %v1282_v38 = vpop.permute.xlu0 %159 }
  0xa1   :  { %v1284_v39 = vpop.permute.xlu1 %164 }
  0xa2   :  { %v1286_v40 = vpop.permute.xlu0 %169 }
  0xa5   :  { %v1288_v41 = vpop.permute.xlu1 %174 }
  0xa6   :  { %v180_v42 = vpop.permute.xlu0 %179 }
  0xa9   :  { %v185_v55 = vpop.permute.xlu1 %184 }
  0xaa   :  { %v190_v13 = vpop.permute.xlu0 %189 }
  0xe7   :  { %v420_v43 = vpop.f32.mrb[0].mxu0  ;;  %v516_v45 = vpop.f32.mrb[0].mxu1 }
  0xe8   :  { %v421_v47 = vadd.f32 %v420_v43, %v100_v27  ;;  %v517_v48 = vadd.f32 %v516_v45, %v180_v42  ;;  %v422_v49 = vpop.f32.mrb[1].mxu0  ;;  %v518_v51 = vpop.f32.mrb[1].mxu1 }
  0xe9   :  { %v423_v53 = vadd.f32 %v422_v49, %v100_v27  ;;  %v519_v54 = vadd.f32 %v518_v51, %v180_v42  ;;  %v616_v27 = vld [vmem:[%s1705_s3 + $0x28] sm:$0xff] }
  0xea   :  { %v675_v56 = vadd.f32 %v611_v44, %v421_v47  ;;  %v707_v57 = vadd.f32 %v643_v46, %v517_v48  ;;  %v648_v42 = vld [vmem:[%s1705_s3 + $0x128] sm:$0xff]  ;;  %v195_v47 = vpop.permute.xlu1 %194 }
  0xeb   :  { %v676_v58 = vadd.f32 %v612_v50, %v423_v53  ;;  %v708_v59 = vadd.f32 %v644_v52, %v519_v54  ;;  %v426_v60 = vpop.f32.mrb[2].mxu0  ;;  %v522_v62 = vpop.f32.mrb[2].mxu1  ;;  %v617_v52 = vld [vmem:[%s1705_s3 + $0x30] sm:$0xff] }
  0xec   :  { %v739_v0 = vmax.f32 %v675_v56, 0.0  ;;  %v771_v1 = vmax.f32 %v707_v57, 0.0  ;;  %v427_v2 = vadd.f32 %v426_v60, %v105_v29  ;;  %v523_v4 = vadd.f32 %v522_v62, %v185_v55  ;;  %v428_v5 = vpop.f32.mrb[3].mxu0  ;;  %v524_v7 = vpop.f32.mrb[3].mxu1  ;;  %v649_v54 = vld [vmem:[%s1705_s3 + $0x130] sm:$0xff]  ;;  %v618_v60 = vld [vmem:[%s1705_s3 + $0x38] sm:$0xff] }
  0xed   :  { %v740_v9 = vmax.f32 %v676_v58, 0.0  ;;  %v772_v10 = vmax.f32 %v708_v59, 0.0  ;;  %v429_v11 = vadd.f32 %v428_v5, %v105_v29  ;;  %v525_v12 = vadd.f32 %v524_v7, %v185_v55  ;;  %v650_v62 = vld [vmem:[%s1705_s3 + $0x138] sm:$0xff] }
  0xee   :  { %803 = vst [vmem:[%s1706_s4] sm:$0xff] %v739_v0  ;;  %835 = vst [vmem:[%s1706_s4 + $0x100] sm:$0xff] %v771_v1  ;;  %v677_v14 = vadd.f32 %v613_v61, %v427_v2  ;;  %v709_v15 = vadd.f32 %v645_v63, %v523_v4  ;;  %v200_v4 = vpop.permute.xlu0 %199 }
  0xef   :  { %804 = vst [vmem:[%s1706_s4 + $0x8] sm:$0xff] %v740_v9  ;;  %836 = vst [vmem:[%s1706_s4 + $0x108] sm:$0xff] %v772_v10  ;;  %v678_v16 = vadd.f32 %v614_v6, %v429_v11  ;;  %v710_v17 = vadd.f32 %v646_v8, %v525_v12  ;;  %v432_v18 = vpop.f32.mrb[4].mxu0  ;;  %v528_v20 = vpop.f32.mrb[4].mxu1  ;;  %v619_v9 = vld [vmem:[%s1705_s3 + $0x40] sm:$0xff] }
  0xf0   :  { %v741_v22 = vmax.f32 %v677_v14, 0.0  ;;  %v773_v23 = vmax.f32 %v709_v15, 0.0  ;;  %v433_v24 = vadd.f32 %v432_v18, %v1262_v28  ;;  %v529_v25 = vadd.f32 %v528_v20, %v190_v13  ;;  %v434_v26 = vpop.f32.mrb[5].mxu0  ;;  %v530_v29 = vpop.f32.mrb[5].mxu1  ;;  %v651_v11 = vld [vmem:[%s1705_s3 + $0x140] sm:$0xff] }
  0xf1   :  { %v742_v43 = vmax.f32 %v678_v16, 0.0  ;;  %v774_v44 = vmax.f32 %v710_v17, 0.0  ;;  %v435_v45 = vadd.f32 %v434_v26, %v1262_v28  ;;  %v531_v46 = vadd.f32 %v530_v29, %v190_v13  ;;  %v620_v17 = vld [vmem:[%s1705_s3 + $0x48] sm:$0xff] }
  0xf2   :  { %805 = vst [vmem:[%s1706_s4 + $0x10] sm:$0xff] %v741_v22  ;;  %837 = vst [vmem:[%s1706_s4 + $0x110] sm:$0xff] %v773_v23  ;;  %v679_v48 = vadd.f32 %v615_v19, %v433_v24  ;;  %v711_v49 = vadd.f32 %v647_v21, %v529_v25  ;;  %v652_v19 = vld [vmem:[%s1705_s3 + $0x148] sm:$0xff]  ;;  %v205_v24 = vpop.permute.xlu1 %204 }
  0xf3   :  { %806 = vst [vmem:[%s1706_s4 + $0x18] sm:$0xff] %v742_v43  ;;  %838 = vst [vmem:[%s1706_s4 + $0x118] sm:$0xff] %v774_v44  ;;  %v680_v28 = vadd.f32 %v616_v27, %v435_v45  ;;  %v712_v50 = vadd.f32 %v648_v42, %v531_v46  ;;  %v438_v51 = vpop.f32.mrb[6].mxu0  ;;  %v534_v53 = vpop.f32.mrb[6].mxu1  ;;  %v621_v42 = vld [vmem:[%s1705_s3 + $0x50] sm:$0xff] }
  0xf4   :  { %v743_v55 = vmax.f32 %v679_v48, 0.0  ;;  %v775_v56 = vmax.f32 %v711_v49, 0.0  ;;  %v439_v57 = vadd.f32 %v438_v51, %v1264_v30  ;;  %v535_v58 = vadd.f32 %v534_v53, %v195_v47  ;;  %v440_v59 = vpop.f32.mrb[7].mxu0  ;;  %v536_v61 = vpop.f32.mrb[7].mxu1  ;;  %v653_v44 = vld [vmem:[%s1705_s3 + $0x150] sm:$0xff]  ;;  %v654_v51 = vld [vmem:[%s1705_s3 + $0x158] sm:$0xff] }
  0xf5   :  { %v744_v63 = vmax.f32 %v680_v28, 0.0  ;;  %v776_v0 = vmax.f32 %v712_v50, 0.0  ;;  %v441_v1 = vadd.f32 %v440_v59, %v1264_v30  ;;  %v537_v2 = vadd.f32 %v536_v61, %v195_v47  ;;  %v622_v28 = vld [vmem:[%s1705_s3 + $0x58] sm:$0xff]  ;;  %v623_v61 = vld [vmem:[%s1705_s3 + $0x60] sm:$0xff] }
  0xf6   :  { %807 = vst [vmem:[%s1706_s4 + $0x20] sm:$0xff] %v743_v55  ;;  %839 = vst [vmem:[%s1706_s4 + $0x120] sm:$0xff] %v775_v56  ;;  %v681_v5 = vadd.f32 %v617_v52, %v439_v57  ;;  %v713_v6 = vadd.f32 %v649_v54, %v535_v58  ;;  %v210_v56 = vpop.permute.xlu0 %209 }
  0xf7   :  { %808 = vst [vmem:[%s1706_s4 + $0x28] sm:$0xff] %v744_v63  ;;  %840 = vst [vmem:[%s1706_s4 + $0x128] sm:$0xff] %v776_v0  ;;  %v682_v30 = vadd.f32 %v618_v60, %v441_v1  ;;  %v714_v7 = vadd.f32 %v650_v62, %v537_v2  ;;  %v444_v8 = vpop.f32.mrb[8].mxu0  ;;  %v540_v10 = vpop.f32.mrb[8].mxu1  ;;  %v655_v63 = vld [vmem:[%s1705_s3 + $0x160] sm:$0xff] }
  0xf8   :  { %v745_v12 = vmax.f32 %v681_v5, 0.0  ;;  %v777_v13 = vmax.f32 %v713_v6, 0.0  ;;  %v445_v14 = vadd.f32 %v444_v8, %v1266_v31  ;;  %v541_v15 = vadd.f32 %v540_v10, %v200_v4  ;;  %v446_v16 = vpop.f32.mrb[9].mxu0  ;;  %v542_v18 = vpop.f32.mrb[9].mxu1  ;;  %v624_v6 = vld [vmem:[%s1705_s3 + $0x68] sm:$0xff] }
  0xf9   :  { %v746_v20 = vmax.f32 %v682_v30, 0.0  ;;  %v778_v21 = vmax.f32 %v714_v7, 0.0  ;;  %v447_v22 = vadd.f32 %v446_v16, %v1266_v31  ;;  %v543_v23 = vadd.f32 %v542_v18, %v200_v4  ;;  %v656_v7 = vld [vmem:[%s1705_s3 + $0x168] sm:$0xff] }
  0xfa   :  { %809 = vst [vmem:[%s1706_s4 + $0x30] sm:$0xff] %v745_v12  ;;  %841 = vst [vmem:[%s1706_s4 + $0x130] sm:$0xff] %v777_v13  ;;  %v683_v25 = vadd.f32 %v619_v9, %v445_v14  ;;  %v715_v26 = vadd.f32 %v651_v11, %v541_v15  ;;  %v215_v12 = vpop.permute.xlu1 %214 }
  0xfb   :  { %810 = vst [vmem:[%s1706_s4 + $0x38] sm:$0xff] %v746_v20  ;;  %842 = vst [vmem:[%s1706_s4 + $0x138] sm:$0xff] %v778_v21  ;;  %v684_v31 = vadd.f32 %v620_v17, %v447_v22  ;;  %v716_v27 = vadd.f32 %v652_v19, %v543_v23  ;;  %v450_v29 = vpop.f32.mrb[10].mxu0  ;;  %v546_v43 = vpop.f32.mrb[10].mxu1  ;;  %v625_v17 = vld [vmem:[%s1705_s3 + $0x70] sm:$0xff] }
  0xfc   :  { %v747_v45 = vmax.f32 %v683_v25, 0.0  ;;  %v779_v46 = vmax.f32 %v715_v26, 0.0  ;;  %v451_v47 = vadd.f32 %v450_v29, %v1268_v3  ;;  %v547_v48 = vadd.f32 %v546_v43, %v205_v24  ;;  %v452_v49 = vpop.f32.mrb[11].mxu0  ;;  %v548_v50 = vpop.f32.mrb[11].mxu1  ;;  %v657_v19 = vld [vmem:[%s1705_s3 + $0x170] sm:$0xff]  ;;  %v626_v25 = vld [vmem:[%s1705_s3 + $0x78] sm:$0xff] }
  0xfd   :  { %v748_v52 = vmax.f32 %v684_v31, 0.0  ;;  %v780_v53 = vmax.f32 %v716_v27, 0.0  ;;  %v453_v54 = vadd.f32 %v452_v49, %v1268_v3  ;;  %v549_v55 = vadd.f32 %v548_v50, %v205_v24  ;;  %v658_v31 = vld [vmem:[%s1705_s3 + $0x178] sm:$0xff]  ;;  %v627_v49 = vld [vmem:[%s1705_s3 + $0x80] sm:$0xff] }
  0xfe   :  { %811 = vst [vmem:[%s1706_s4 + $0x40] sm:$0xff] %v747_v45  ;;  %843 = vst [vmem:[%s1706_s4 + $0x140] sm:$0xff] %v779_v46  ;;  %v685_v57 = vadd.f32 %v621_v42, %v451_v47  ;;  %v717_v58 = vadd.f32 %v653_v44, %v547_v48  ;;  %v220_v44 = vpop.permute.xlu0 %219  ;;  %v659_v50 = vld [vmem:[%s1705_s3 + $0x180] sm:$0xff] }
  0xff   :  { %812 = vst [vmem:[%s1706_s4 + $0x48] sm:$0xff] %v748_v52  ;;  %844 = vst [vmem:[%s1706_s4 + $0x148] sm:$0xff] %v780_v53  ;;  %v686_v3 = vadd.f32 %v622_v28, %v453_v54  ;;  %v718_v59 = vadd.f32 %v654_v51, %v549_v55  ;;  %v456_v60 = vpop.f32.mrb[12].mxu0  ;;  %v552_v62 = vpop.f32.mrb[12].mxu1 }
 0x100   :  { %v749_v0 = vmax.f32 %v685_v57, 0.0  ;;  %v781_v1 = vmax.f32 %v717_v58, 0.0  ;;  %v457_v2 = vadd.f32 %v456_v60, %v1270_v32  ;;  %v553_v4 = vadd.f32 %v552_v62, %v210_v56  ;;  %v458_v5 = vpop.f32.mrb[13].mxu0  ;;  %v554_v30 = vpop.f32.mrb[13].mxu1  ;;  %v660_v58 = vld [vmem:[%s1705_s3 + $0x188] sm:$0xff] }
 0x101   :  { %v750_v8 = vmax.f32 %v686_v3, 0.0  ;;  %v782_v9 = vmax.f32 %v718_v59, 0.0  ;;  %v459_v10 = vadd.f32 %v458_v5, %v1270_v32  ;;  %v555_v11 = vadd.f32 %v554_v30, %v210_v56  ;;  %v628_v56 = vld [vmem:[%s1705_s3 + $0x88] sm:$0xff]  ;;  %v225_v62 = vpop.permute.xlu1 %224 }
 0x102   :  { %813 = vst [vmem:[%s1706_s4 + $0x50] sm:$0xff] %v749_v0  ;;  %845 = vst [vmem:[%s1706_s4 + $0x150] sm:$0xff] %v781_v1  ;;  %v687_v13 = vadd.f32 %v623_v61, %v457_v2  ;;  %v719_v14 = vadd.f32 %v655_v63, %v553_v4  ;;  %v629_v4 = vld [vmem:[%s1705_s3 + $0x90] sm:$0xff] }
 0x103   :  { %814 = vst [vmem:[%s1706_s4 + $0x58] sm:$0xff] %v750_v8  ;;  %846 = vst [vmem:[%s1706_s4 + $0x158] sm:$0xff] %v782_v9  ;;  %v688_v32 = vadd.f32 %v624_v6, %v459_v10  ;;  %v720_v15 = vadd.f32 %v656_v7, %v555_v11  ;;  %v462_v16 = vpop.f32.mrb[14].mxu0  ;;  %v558_v18 = vpop.f32.mrb[14].mxu1  ;;  %v661_v6 = vld [vmem:[%s1705_s3 + $0x190] sm:$0xff]  ;;  %v630_v11 = vld [vmem:[%s1705_s3 + $0x98] sm:$0xff] }
 0x104   :  { %v751_v20 = vmax.f32 %v687_v13, 0.0  ;;  %v783_v21 = vmax.f32 %v719_v14, 0.0  ;;  %v463_v22 = vadd.f32 %v462_v16, %v1272_v33  ;;  %v559_v23 = vadd.f32 %v558_v18, %v215_v12  ;;  %v464_v24 = vpop.f32.mrb[15].mxu0  ;;  %v560_v26 = vpop.f32.mrb[15].mxu1  ;;  %v662_v13 = vld [vmem:[%s1705_s3 + $0x198] sm:$0xff] }
 0x105   :  { %v752_v27 = vmax.f32 %v688_v32, 0.0  ;;  %v784_v29 = vmax.f32 %v720_v15, 0.0  ;;  %v465_v42 = vadd.f32 %v464_v24, %v1272_v33  ;;  %v561_v43 = vadd.f32 %v560_v26, %v215_v12  ;;  %v663_v24 = vld [vmem:[%s1705_s3 + $0x1a0] sm:$0xff] }
 0x106   :  { %815 = vst [vmem:[%s1706_s4 + $0x60] sm:$0xff] %v751_v20  ;;  %847 = vst [vmem:[%s1706_s4 + $0x160] sm:$0xff] %v783_v21  ;;  %v689_v45 = vadd.f32 %v625_v17, %v463_v22  ;;  %v721_v46 = vadd.f32 %v657_v19, %v559_v23  ;;  %v230_v17 = vpop.permute.xlu0 %229  ;;  %v631_v22 = vld [vmem:[%s1705_s3 + $0xa0] sm:$0xff] }
 0x107   :  { %816 = vst [vmem:[%s1706_s4 + $0x68] sm:$0xff] %v752_v27  ;;  %848 = vst [vmem:[%s1706_s4 + $0x168] sm:$0xff] %v784_v29  ;;  %v690_v33 = vadd.f32 %v626_v25, %v465_v42  ;;  %v722_v47 = vadd.f32 %v658_v31, %v561_v43  ;;  %v468_v48 = vpop.f32.mrb[16].mxu0  ;;  %v564_v28 = vpop.f32.mrb[16].mxu1  ;;  %v632_v42 = vld [vmem:[%s1705_s3 + $0xa8] sm:$0xff] }
 0x108   :  { %v753_v51 = vmax.f32 %v689_v45, 0.0  ;;  %v785_v52 = vmax.f32 %v721_v46, 0.0  ;;  %v469_v53 = vadd.f32 %v468_v48, %v1274_v34  ;;  %v565_v54 = vadd.f32 %v564_v28, %v220_v44  ;;  %v470_v55 = vpop.f32.mrb[17].mxu0  ;;  %v566_v57 = vpop.f32.mrb[17].mxu1 }
 0x109   :  { %v754_v3 = vmax.f32 %v690_v33, 0.0  ;;  %v786_v59 = vmax.f32 %v722_v47, 0.0  ;;  %v471_v60 = vadd.f32 %v470_v55, %v1274_v34  ;;  %v567_v61 = vadd.f32 %v566_v57, %v220_v44  ;;  %v664_v44 = vld [vmem:[%s1705_s3 + $0x1a8] sm:$0xff]  ;;  %v235_v48 = vpop.permute.xlu1 %234 }
 0x10a   :  { %817 = vst [vmem:[%s1706_s4 + $0x70] sm:$0xff] %v753_v51  ;;  %849 = vst [vmem:[%s1706_s4 + $0x170] sm:$0xff] %v785_v52  ;;  %v691_v63 = vadd.f32 %v627_v49, %v469_v53  ;;  %v723_v0 = vadd.f32 %v659_v50, %v565_v54  ;;  %v633_v52 = vld [vmem:[%s1705_s3 + $0xb0] sm:$0xff] }
 0x10b   :  { %818 = vst [vmem:[%s1706_s4 + $0x78] sm:$0xff] %v754_v3  ;;  %850 = vst [vmem:[%s1706_s4 + $0x178] sm:$0xff] %v786_v59  ;;  %v692_v34 = vadd.f32 %v628_v56, %v471_v60  ;;  %v724_v1 = vadd.f32 %v660_v58, %v567_v61  ;;  %v474_v2 = vpop.f32.mrb[18].mxu0  ;;  %v570_v5 = vpop.f32.mrb[18].mxu1  ;;  %v665_v54 = vld [vmem:[%s1705_s3 + $0x1b0] sm:$0xff]  ;;  %v634_v59 = vld [vmem:[%s1705_s3 + $0xb8] sm:$0xff] }
 0x10c   :  { %v755_v30 = vmax.f32 %v691_v63, 0.0  ;;  %v787_v7 = vmax.f32 %v723_v0, 0.0  ;;  %v475_v8 = vadd.f32 %v474_v2, %v1276_v35  ;;  %v571_v9 = vadd.f32 %v570_v5, %v225_v62  ;;  %v476_v10 = vpop.f32.mrb[19].mxu0  ;;  %v572_v12 = vpop.f32.mrb[19].mxu1  ;;  %v666_v61 = vld [vmem:[%s1705_s3 + $0x1b8] sm:$0xff] }
 0x10d   :  { %v756_v14 = vmax.f32 %v692_v34, 0.0  ;;  %v788_v32 = vmax.f32 %v724_v1, 0.0  ;;  %v477_v15 = vadd.f32 %v476_v10, %v1276_v35  ;;  %v573_v16 = vadd.f32 %v572_v12, %v225_v62  ;;  %v240_v1 = vpop.permute.xlu0 %239 }
 0x10e   :  { %819 = vst [vmem:[%s1706_s4 + $0x80] sm:$0xff] %v755_v30  ;;  %851 = vst [vmem:[%s1706_s4 + $0x180] sm:$0xff] %v787_v7  ;;  %v693_v18 = vadd.f32 %v629_v4, %v475_v8  ;;  %v725_v19 = vadd.f32 %v661_v6, %v571_v9  ;;  %v635_v30 = vld [vmem:[%s1705_s3 + $0xc0] sm:$0xff] }
 0x10f   :  { %820 = vst [vmem:[%s1706_s4 + $0x88] sm:$0xff] %v756_v14  ;;  %852 = vst [vmem:[%s1706_s4 + $0x188] sm:$0xff] %v788_v32  ;;  %v694_v35 = vadd.f32 %v630_v11, %v477_v15  ;;  %v726_v20 = vadd.f32 %v662_v13, %v573_v16  ;;  %v480_v21 = vpop.f32.mrb[20].mxu0  ;;  %v576_v23 = vpop.f32.mrb[20].mxu1  ;;  %v667_v8 = vld [vmem:[%s1705_s3 + $0x1c0] sm:$0xff]  ;;  %v636_v14 = vld [vmem:[%s1705_s3 + $0xc8] sm:$0xff] }
 0x110   :  { %v757_v25 = vmax.f32 %v693_v18, 0.0  ;;  %v789_v26 = vmax.f32 %v725_v19, 0.0  ;;  %v481_v31 = vadd.f32 %v480_v21, %v1278_v36  ;;  %v577_v27 = vadd.f32 %v576_v23, %v230_v17  ;;  %v482_v29 = vpop.f32.mrb[21].mxu0  ;;  %v578_v43 = vpop.f32.mrb[21].mxu1  ;;  %v668_v15 = vld [vmem:[%s1705_s3 + $0x1c8] sm:$0xff] }
 0x111   :  { %v758_v45 = vmax.f32 %v694_v35, 0.0  ;;  %v790_v46 = vmax.f32 %v726_v20, 0.0  ;;  %v483_v33 = vadd.f32 %v482_v29, %v1278_v36  ;;  %v579_v47 = vadd.f32 %v578_v43, %v230_v17  ;;  %v245_v35 = vpop.permute.xlu1 %244 }
 0x112   :  { %821 = vst [vmem:[%s1706_s4 + $0x90] sm:$0xff] %v757_v25  ;;  %853 = vst [vmem:[%s1706_s4 + $0x190] sm:$0xff] %v789_v26  ;;  %v695_v49 = vadd.f32 %v631_v22, %v481_v31  ;;  %v727_v28 = vadd.f32 %v663_v24, %v577_v27  ;;  %v637_v24 = vld [vmem:[%s1705_s3 + $0xd0] sm:$0xff] }
 0x113   :  { %822 = vst [vmem:[%s1706_s4 + $0x98] sm:$0xff] %v758_v45  ;;  %854 = vst [vmem:[%s1706_s4 + $0x198] sm:$0xff] %v790_v46  ;;  %v696_v36 = vadd.f32 %v632_v42, %v483_v33  ;;  %v728_v50 = vadd.f32 %v664_v44, %v579_v47  ;;  %v486_v51 = vpop.f32.mrb[22].mxu0  ;;  %v582_v53 = vpop.f32.mrb[22].mxu1  ;;  %v669_v26 = vld [vmem:[%s1705_s3 + $0x1d0] sm:$0xff]  ;;  %v638_v44 = vld [vmem:[%s1705_s3 + $0xd8] sm:$0xff] }
 0x114   :  { %v759_v55 = vmax.f32 %v695_v49, 0.0  ;;  %v791_v56 = vmax.f32 %v727_v28, 0.0  ;;  %v487_v57 = vadd.f32 %v486_v51, %v1280_v37  ;;  %v583_v58 = vadd.f32 %v582_v53, %v235_v48  ;;  %v488_v3 = vpop.f32.mrb[23].mxu0  ;;  %v584_v60 = vpop.f32.mrb[23].mxu1  ;;  %v670_v46 = vld [vmem:[%s1705_s3 + $0x1d8] sm:$0xff]  ;;  %v639_v53 = vld [vmem:[%s1705_s3 + $0xe0] sm:$0xff] }
 0x115   :  { %v760_v62 = vmax.f32 %v696_v36, 0.0  ;;  %v792_v63 = vmax.f32 %v728_v50, 0.0  ;;  %v489_v0 = vadd.f32 %v488_v3, %v1280_v37  ;;  %v585_v34 = vadd.f32 %v584_v60, %v235_v48  ;;  %v250_v28 = vpop.permute.xlu0 %249  ;;  %v640_v60 = vld [vmem:[%s1705_s3 + $0xe8] sm:$0xff] }
 0x116   :  { %823 = vst [vmem:[%s1706_s4 + $0xa0] sm:$0xff] %v759_v55  ;;  %855 = vst [vmem:[%s1706_s4 + $0x1a0] sm:$0xff] %v791_v56  ;;  %v697_v2 = vadd.f32 %v633_v52, %v487_v57  ;;  %v729_v4 = vadd.f32 %v665_v54, %v583_v58  ;;  %v671_v55 = vld [vmem:[%s1705_s3 + $0x1e0] sm:$0xff] }
 0x117   :  { %824 = vst [vmem:[%s1706_s4 + $0xa8] sm:$0xff] %v760_v62  ;;  %856 = vst [vmem:[%s1706_s4 + $0x1a8] sm:$0xff] %v792_v63  ;;  %v698_v37 = vadd.f32 %v634_v59, %v489_v0  ;;  %v730_v5 = vadd.f32 %v666_v61, %v585_v34  ;;  %v492_v6 = vpop.f32.mrb[24].mxu0  ;;  %v588_v7 = vpop.f32.mrb[24].mxu1  ;;  %v672_v62 = vld [vmem:[%s1705_s3 + $0x1e8] sm:$0xff] }
 0x118   :  { %v761_v9 = vmax.f32 %v697_v2, 0.0  ;;  %v793_v10 = vmax.f32 %v729_v4, 0.0  ;;  %v493_v11 = vadd.f32 %v492_v6, %v1282_v38  ;;  %v589_v12 = vadd.f32 %v588_v7, %v240_v1  ;;  %v494_v13 = vpop.f32.mrb[25].mxu0  ;;  %v590_v32 = vpop.f32.mrb[25].mxu1 }
 0x119   :  { %v762_v16 = vmax.f32 %v698_v37, 0.0  ;;  %v794_v17 = vmax.f32 %v730_v5, 0.0  ;;  %v495_v18 = vadd.f32 %v494_v13, %v1282_v38  ;;  %v591_v19 = vadd.f32 %v590_v32, %v240_v1  ;;  %v255_v2 = vpop.permute.xlu1 %254 }
 0x11a   :  { %825 = vst [vmem:[%s1706_s4 + $0xb0] sm:$0xff] %v761_v9  ;;  %857 = vst [vmem:[%s1706_s4 + $0x1b0] sm:$0xff] %v793_v10  ;;  %v699_v20 = vadd.f32 %v635_v30, %v493_v11  ;;  %v731_v21 = vadd.f32 %v667_v8, %v589_v12  ;;  %v641_v30 = vld [vmem:[%s1705_s3 + $0xf0] sm:$0xff] }
 0x11b   :  { %826 = vst [vmem:[%s1706_s4 + $0xb8] sm:$0xff] %v762_v16  ;;  %858 = vst [vmem:[%s1706_s4 + $0x1b8] sm:$0xff] %v794_v17  ;;  %v700_v38 = vadd.f32 %v636_v14, %v495_v18  ;;  %v732_v22 = vadd.f32 %v668_v15, %v591_v19  ;;  %v498_v23 = vpop.f32.mrb[26].mxu0  ;;  %v594_v25 = vpop.f32.mrb[26].mxu1  ;;  %v673_v8 = vld [vmem:[%s1705_s3 + $0x1f0] sm:$0xff]  ;;  %v642_v14 = vld [vmem:[%s1705_s3 + $0xf8] sm:$0xff] }
 0x11c   :  { %v763_v31 = vmax.f32 %v699_v20, 0.0  ;;  %v795_v27 = vmax.f32 %v731_v21, 0.0  ;;  %v499_v29 = vadd.f32 %v498_v23, %v1284_v39  ;;  %v595_v42 = vadd.f32 %v594_v25, %v245_v35  ;;  %v500_v43 = vpop.f32.mrb[27].mxu0  ;;  %v596_v45 = vpop.f32.mrb[27].mxu1  ;;  %v674_v15 = vld [vmem:[%s1705_s3 + $0x1f8] sm:$0xff] }
 0x11d   :  { %v764_v33 = vmax.f32 %v700_v38, 0.0  ;;  %v796_v47 = vmax.f32 %v732_v22, 0.0  ;;  %v501_v48 = vadd.f32 %v500_v43, %v1284_v39  ;;  %v597_v49 = vadd.f32 %v596_v45, %v245_v35 }
 0x11e   :  { %827 = vst [vmem:[%s1706_s4 + $0xc0] sm:$0xff] %v763_v31  ;;  %859 = vst [vmem:[%s1706_s4 + $0x1c0] sm:$0xff] %v795_v27  ;;  %v701_v36 = vadd.f32 %v637_v24, %v499_v29  ;;  %v733_v50 = vadd.f32 %v669_v26, %v595_v42 }
 0x11f   :  { %828 = vst [vmem:[%s1706_s4 + $0xc8] sm:$0xff] %v764_v33  ;;  %860 = vst [vmem:[%s1706_s4 + $0x1c8] sm:$0xff] %v796_v47  ;;  %v702_v39 = vadd.f32 %v638_v44, %v501_v48  ;;  %v734_v51 = vadd.f32 %v670_v46, %v597_v49  ;;  %v504_v52 = vpop.f32.mrb[28].mxu0  ;;  %v600_v54 = vpop.f32.mrb[28].mxu1 }
 0x120   :  { %v765_v56 = vmax.f32 %v701_v36, 0.0  ;;  %v797_v57 = vmax.f32 %v733_v50, 0.0  ;;  %v505_v58 = vadd.f32 %v504_v52, %v1286_v40  ;;  %v601_v3 = vadd.f32 %v600_v54, %v250_v28  ;;  %v506_v59 = vpop.f32.mrb[29].mxu0  ;;  %v602_v61 = vpop.f32.mrb[29].mxu1 }
 0x121   :  { %v766_v63 = vmax.f32 %v702_v39, 0.0  ;;  %v798_v0 = vmax.f32 %v734_v51, 0.0  ;;  %v507_v34 = vadd.f32 %v506_v59, %v1286_v40  ;;  %v603_v1 = vadd.f32 %v602_v61, %v250_v28 }
 0x122   :  { %829 = vst [vmem:[%s1706_s4 + $0xd0] sm:$0xff] %v765_v56  ;;  %861 = vst [vmem:[%s1706_s4 + $0x1d0] sm:$0xff] %v797_v57  ;;  %v703_v4 = vadd.f32 %v639_v53, %v505_v58  ;;  %v735_v37 = vadd.f32 %v671_v55, %v601_v3 }
 0x123   :  { %830 = vst [vmem:[%s1706_s4 + $0xd8] sm:$0xff] %v766_v63  ;;  %862 = vst [vmem:[%s1706_s4 + $0x1d8] sm:$0xff] %v798_v0  ;;  %v704_v40 = vadd.f32 %v640_v60, %v507_v34  ;;  %v736_v5 = vadd.f32 %v672_v62, %v603_v1  ;;  %v510_v6 = vpop.f32.mrb[30].mxu0  ;;  %v606_v7 = vpop.f32.mrb[30].mxu1 }
 0x124   :  { %v767_v9 = vmax.f32 %v703_v4, 0.0  ;;  %v799_v10 = vmax.f32 %v735_v37, 0.0  ;;  %v511_v11 = vadd.f32 %v510_v6, %v1288_v41  ;;  %v607_v12 = vadd.f32 %v606_v7, %v255_v2  ;;  %v512_v13 = vpop.f32.mrb[31].mxu0  ;;  %v608_v32 = vpop.f32.mrb[31].mxu1 }
 0x125   :  { %v768_v16 = vmax.f32 %v704_v40, 0.0  ;;  %v800_v17 = vmax.f32 %v736_v5, 0.0  ;;  %v513_v18 = vadd.f32 %v512_v13, %v1288_v41  ;;  %v609_v19 = vadd.f32 %v608_v32, %v255_v2 }
 0x126   :  { %831 = vst [vmem:[%s1706_s4 + $0xe0] sm:$0xff] %v767_v9  ;;  %863 = vst [vmem:[%s1706_s4 + $0x1e0] sm:$0xff] %v799_v10  ;;  %v705_v35 = vadd.f32 %v641_v30, %v511_v11  ;;  %v737_v20 = vadd.f32 %v673_v8, %v607_v12 }
 0x127   :  { %832 = vst [vmem:[%s1706_s4 + $0xe8] sm:$0xff] %v768_v16  ;;  %864 = vst [vmem:[%s1706_s4 + $0x1e8] sm:$0xff] %v800_v17  ;;  %v706_v41 = vadd.f32 %v642_v14, %v513_v18  ;;  %v738_v21 = vadd.f32 %v674_v15, %v609_v19 }
 0x128   :  { %v769_v38 = vmax.f32 %v705_v35, 0.0  ;;  %v801_v22 = vmax.f32 %v737_v20, 0.0 }
 0x129   :  { %v770_v23 = vmax.f32 %v706_v41, 0.0  ;;  %v802_v24 = vmax.f32 %v738_v21, 0.0 }
 0x12a   :  { %833 = vst [vmem:[%s1706_s4 + $0xf0] sm:$0xff] %v769_v38  ;;  %865 = vst [vmem:[%s1706_s4 + $0x1f0] sm:$0xff] %v801_v22 }
 0x12b   :  { %834 = vst [vmem:[%s1706_s4 + $0xf8] sm:$0xff] %v770_v23  ;;  %866 = vst [vmem:[%s1706_s4 + $0x1f8] sm:$0xff] %v802_v24 }

// kernel: tpu_custom_call.1
= control target key start
LH: loop header
LB: loop body
LE: loop exit
PB: predicated region body
PF: predicated region fallthrough
CT: control target
= control target key end

     0   :  { %v931_v3 = vmov 0.0   ;;  %v932_v8 = vmov 0   ;;  %vm257_vm0 = vcmask 523264   ;;  %s1702_s2 = inlined_call_operand.vmem [shape: f32[1,64,196], index: 2, kind: input, shape index: {}]   ;;  %s1703_s1 = inlined_call_operand.vmem [shape: f32[256,1], index: 1, kind: input, shape index: {}]   ;;  %s1704_s0 = inlined_call_operand.vmem [shape: f32[256,64], index: 0, kind: input, shape index: {}]   ;;  %s1705_s3 = inlined_call_operand.vmem [shape: f32[1,256,196], index: 3, kind: input, shape index: {}]   ;;  %s1706_s4 = inlined_call_operand.vmem [shape: f32[1,256,196], index: 4, kind: output, shape index: {}]  }
   0x1   :  { %v50_v0 = vld [vmem:[%s1702_s2 + $0x8] sm:$0xff]  ;;  %v52_v1 = vld [vmem:[%s1702_s2 + $0x18] sm:$0xff]  ;;  %v49_v2 = vld [vmem:[%s1702_s2] sm:$0xff]  ;;  %418 = vmatprep.mubr.f32.mxu0 %v931_v3  ;;  %514 = vmatprep.mubr.f32.mxu1 %v931_v3 }
   0x2   :  { %v903_v4 = vpack.c.bf16 %v52_v1, %v50_v0  ;;  %v51_v5 = vld [vmem:[%s1702_s2 + $0x10] sm:$0xff]  ;;  %v54_v6 = vld [vmem:[%s1702_s2 + $0x28] sm:$0xff]  ;;  %v56_v7 = vld [vmem:[%s1702_s2 + $0x38] sm:$0xff]  ;;  %930 = vset.pattern.permute.xlu1 %v932_v8  ;;  %929 = vset.pattern.permute.xlu0 %v932_v8 }
   0x3   :  { %v905_v9 = vpack.c.bf16 %v51_v5, %v49_v2  ;;  %v907_v10 = vpack.c.bf16 %v56_v7, %v54_v6  ;;  %v53_v11 = vld [vmem:[%s1702_s2 + $0x20] sm:$0xff]  ;;  %v55_v12 = vld [vmem:[%s1702_s2 + $0x30] sm:$0xff]  ;;  %v58_v13 = vld [vmem:[%s1702_s2 + $0x48] sm:$0xff] }
   0x4   :  { %904 = vmatprep.subr.bf16.mxu0 %v903_v4  ;;  %919 = vmatprep.subr.bf16.mxu1 %v903_v4  ;;  %v60_v14 = vld [vmem:[%s1702_s2 + $0x58] sm:$0xff]  ;;  %v909_v15 = vpack.c.bf16 %v55_v12, %v53_v11  ;;  %v57_v17 = vld [vmem:[%s1702_s2 + $0x40] sm:$0xff]  ;;  %v59_v18 = vld [vmem:[%s1702_s2 + $0x50] sm:$0xff] }
   0x5   :  { %906 = vmatpush1.bf16.msra.mxu0 %v905_v9  ;;  %923 = vmatpush1.bf16.msra.mxu1 %v905_v9  ;;  %v911_v16 = vpack.c.bf16 %v60_v14, %v58_v13  ;;  %v62_v19 = vld [vmem:[%s1702_s2 + $0x68] sm:$0xff]  ;;  %v64_v20 = vld [vmem:[%s1702_s2 + $0x78] sm:$0xff]  ;;  %v913_v21 = vpack.c.bf16 %v59_v18, %v57_v17  ;;  %v61_v23 = vld [vmem:[%s1702_s2 + $0x60] sm:$0xff] }
   0x6   :  { %908 = vmatprep.subr.bf16.mxu0 %v907_v10  ;;  %920 = vmatprep.subr.bf16.mxu1 %v907_v10  ;;  %v915_v22 = vpack.c.bf16 %v64_v20, %v62_v19  ;;  %v63_v24 = vld [vmem:[%s1702_s2 + $0x70] sm:$0xff]  ;;  %v65_v26 = vld [vmem:[%s1703_s1] sm:$0xff]  ;;  %v68_v28 = vld [vmem:[%s1703_s1 + $0x18] sm:$0xff] }
   0x7   :  { %v67_v25 = vld [vmem:[%s1703_s1 + $0x10] sm:$0xff]  ;;  %99 = vperm.xlu0 %929, %v65_v26   ;;  %v917_v27 = vpack.c.bf16 %v63_v24, %v61_v23  ;;  %v66_v29 = vld [vmem:[%s1703_s1 + $0x8] sm:$0xff]  ;;  %v17_v30 = vld [vmem:[%s1704_s0] sm:$0xff] }
   0x8   :  { %109 = vperm.xlu1 %930, %v67_v25   ;;  %v33_v31 = vld [vmem:[%s1704_s0 + $0x80] sm:$0xff]  ;;  %v70_v32 = vld [vmem:[%s1703_s1 + $0x28] sm:$0xff]  ;;  %v72_v36 = vld [vmem:[%s1703_s1 + $0x38] sm:$0xff] }
   0x9   :  { %910 = vmatpush1.bf16.msra.mxu0 %v909_v15  ;;  %924 = vmatpush1.bf16.msra.mxu1 %v909_v15  ;;  %v69_v33 = vld [vmem:[%s1703_s1 + $0x20] sm:$0xff]  ;;  %v18_v34 = vld [vmem:[%s1704_s0 + $0x8] sm:$0xff]  ;;  %v71_v37 = vld [vmem:[%s1703_s1 + $0x30] sm:$0xff] }
   0xa   :  { %912 = vmatprep.subr.bf16.mxu0 %v911_v16  ;;  %921 = vmatprep.subr.bf16.mxu1 %v911_v16  ;;  %v34_v35 = vld [vmem:[%s1704_s0 + $0x88] sm:$0xff]  ;;  %v19_v38 = vld [vmem:[%s1704_s0 + $0x10] sm:$0xff]  ;;  %v73_v41 = vld [vmem:[%s1703_s1 + $0x40] sm:$0xff] }
   0xb   :  { %104 = vperm.xlu0 %929, %v66_v29   ;;  %v35_v39 = vld [vmem:[%s1704_s0 + $0x90] sm:$0xff]  ;;  %v74_v40 = vld [vmem:[%s1703_s1 + $0x48] sm:$0xff]  ;;  %v20_v42 = vld [vmem:[%s1704_s0 + $0x18] sm:$0xff] }
   0xc   :  { %114 = vperm.xlu1 %930, %v68_v28   ;;  %v36_v43 = vld [vmem:[%s1704_s0 + $0x98] sm:$0xff]  ;;  %v75_v45 = vld [vmem:[%s1703_s1 + $0x50] sm:$0xff]  ;;  %v21_v46 = vld [vmem:[%s1704_s0 + $0x20] sm:$0xff] }
   0xd   :  { %914 = vmatpush1.bf16.msra.mxu0 %v913_v21  ;;  %925 = vmatpush1.bf16.msra.mxu1 %v913_v21  ;;  %v76_v44 = vld [vmem:[%s1703_s1 + $0x58] sm:$0xff]  ;;  %v37_v47 = vld [vmem:[%s1704_s0 + $0xa0] sm:$0xff]  ;;  %v78_v48 = vld [vmem:[%s1703_s1 + $0x68] sm:$0xff] }
   0xe   :  { %916 = vmatprep.subr.bf16.mxu0 %v915_v22  ;;  %922 = vmatprep.subr.bf16.mxu1 %v915_v22  ;;  %v77_v49 = vld [vmem:[%s1703_s1 + $0x60] sm:$0xff]  ;;  %v22_v50 = vld [vmem:[%s1704_s0 + $0x28] sm:$0xff]  ;;  %v80_v52 = vld [vmem:[%s1703_s1 + $0x78] sm:$0xff] }
   0xf   :  { %119 = vperm.xlu0 %929, %v69_v33   ;;  %v38_v51 = vld [vmem:[%s1704_s0 + $0xa8] sm:$0xff]  ;;  %v79_v53 = vld [vmem:[%s1703_s1 + $0x70] sm:$0xff]  ;;  %v81_v57 = vld [vmem:[%s1703_s1 + $0x80] sm:$0xff] }
  0x10   :  { %124 = vperm.xlu1 %930, %v70_v32   ;;  %v23_v54 = vld [vmem:[%s1704_s0 + $0x30] sm:$0xff]  ;;  %v82_v56 = vld [vmem:[%s1703_s1 + $0x88] sm:$0xff]  ;;  %v24_v58 = vld [vmem:[%s1704_s0 + $0x38] sm:$0xff] }
  0x11   :  { %918 = vmatpush1.bf16.msra.mxu0 %v917_v27  ;;  %926 = vmatpush1.bf16.msra.mxu1 %v917_v27  ;;  %v39_v55 = vld [vmem:[%s1704_s0 + $0xb0] sm:$0xff]  ;;  %v40_v59 = vld [vmem:[%s1704_s0 + $0xb8] sm:$0xff]  ;;  %v25_v62 = vld [vmem:[%s1704_s0 + $0x40] sm:$0xff] }
  0x12   :  { %v84_v60 = vld [vmem:[%s1703_s1 + $0x98] sm:$0xff]  ;;  %v83_v61 = vld [vmem:[%s1703_s1 + $0x90] sm:$0xff]  ;;  %v41_v63 = vld [vmem:[%s1704_s0 + $0xc0] sm:$0xff] }
  0x13   :  { %129 = vperm.xlu0 %929, %v71_v37   ;;  %v86_v0 = vld [vmem:[%s1703_s1 + $0xa8] sm:$0xff]  ;;  %v85_v1 = vld [vmem:[%s1703_s1 + $0xa0] sm:$0xff]  ;;  %v88_v5 = vld [vmem:[%s1703_s1 + $0xb8] sm:$0xff] }
  0x14   :  { %871 = vmatmul.mubr.msk.f32.vlgmr.msra.gmra.mrb[0].mxu0 %vm257_vm0, %v17_v30  ;;  %887 = vmatmul.mubr.msk.f32.vlgmr.msra.gmra.mrb[0].mxu1 %vm257_vm0, %v33_v31  ;;  %v26_v2 = vld [vmem:[%s1704_s0 + $0x48] sm:$0xff]  ;;  %v87_v6 = vld [vmem:[%s1703_s1 + $0xb0] sm:$0xff]  ;;  %v89_v10 = vld [vmem:[%s1703_s1 + $0xc0] sm:$0xff] }
  0x15   :  { %424 = vmatprep.mubr.f32.mxu0 %v931_v3  ;;  %520 = vmatprep.mubr.f32.mxu1 %v931_v3  ;;  %v42_v4 = vld [vmem:[%s1704_s0 + $0xc8] sm:$0xff]  ;;  %v27_v7 = vld [vmem:[%s1704_s0 + $0x50] sm:$0xff]  ;;  %v28_v11 = vld [vmem:[%s1704_s0 + $0x58] sm:$0xff] }
  0x16   :  { %134 = vperm.xlu1 %930, %v72_v36   ;;  %v43_v8 = vld [vmem:[%s1704_s0 + $0xd0] sm:$0xff]  ;;  %v90_v9 = vld [vmem:[%s1703_s1 + $0xc8] sm:$0xff]  ;;  %v44_v12 = vld [vmem:[%s1704_s0 + $0xd8] sm:$0xff] }
  0x17   :  { %139 = vperm.xlu0 %929, %v73_v41   ;;  %v92_v13 = vld [vmem:[%s1703_s1 + $0xd8] sm:$0xff]  ;;  %v91_v14 = vld [vmem:[%s1703_s1 + $0xd0] sm:$0xff]  ;;  %v29_v15 = vld [vmem:[%s1704_s0 + $0x60] sm:$0xff] }
  0x18   :  { %872 = vmatmul.mubr.msk.f32.gmra.mrb[2].mxu0 %vm257_vm0, %v18_v34  ;;  %888 = vmatmul.mubr.msk.f32.gmra.mrb[2].mxu1 %vm257_vm0, %v34_v35  ;;  %v45_v16 = vld [vmem:[%s1704_s0 + $0xe0] sm:$0xff]  ;;  %v94_v17 = vld [vmem:[%s1703_s1 + $0xe8] sm:$0xff]  ;;  %v96_v21 = vld [vmem:[%s1703_s1 + $0xf8] sm:$0xff] }
  0x19   :  { %430 = vmatprep.mubr.f32.mxu0 %v931_v3  ;;  %526 = vmatprep.mubr.f32.mxu1 %v931_v3  ;;  %v93_v18 = vld [vmem:[%s1703_s1 + $0xe0] sm:$0xff]  ;;  %v30_v19 = vld [vmem:[%s1704_s0 + $0x68] sm:$0xff]  ;;  %v95_v22 = vld [vmem:[%s1703_s1 + $0xf0] sm:$0xff] }
  0x1a   :  { %144 = vperm.xlu1 %930, %v74_v40   ;;  %v46_v20 = vld [vmem:[%s1704_s0 + $0xe8] sm:$0xff]  ;;  %v31_v23 = vld [vmem:[%s1704_s0 + $0x70] sm:$0xff]  ;;  %v32_v25 = vld [vmem:[%s1704_s0 + $0x78] sm:$0xff] }
  0x1b   :  { %149 = vperm.xlu0 %929, %v75_v45   ;;  %v47_v24 = vld [vmem:[%s1704_s0 + $0xf0] sm:$0xff]  ;;  %v48_v26 = vld [vmem:[%s1704_s0 + $0xf8] sm:$0xff] }
  0x1c   :  { %873 = vmatmul.mubr.msk.f32.gmra.mrb[4].mxu0 %vm257_vm0, %v19_v38  ;;  %889 = vmatmul.mubr.msk.f32.gmra.mrb[4].mxu1 %vm257_vm0, %v35_v39 }
  0x1d   :  { %436 = vmatprep.mubr.f32.mxu0 %v931_v3  ;;  %532 = vmatprep.mubr.f32.mxu1 %v931_v3 }
  0x1e   :  { %154 = vperm.xlu1 %930, %v76_v44   ;;  %v611_v44 = vld [vmem:[%s1705_s3] sm:$0xff] }
  0x1f   :  { %159 = vperm.xlu0 %929, %v77_v49  }
  0x20   :  { %874 = vmatmul.mubr.msk.f32.gmra.mrb[6].mxu0 %vm257_vm0, %v20_v42  ;;  %890 = vmatmul.mubr.msk.f32.gmra.mrb[6].mxu1 %vm257_vm0, %v36_v43 }
  0x21   :  { %442 = vmatprep.mubr.f32.mxu0 %v931_v3  ;;  %538 = vmatprep.mubr.f32.mxu1 %v931_v3 }
  0x22   :  { %164 = vperm.xlu1 %930, %v78_v48  }
  0x23   :  { %169 = vperm.xlu0 %929, %v79_v53  }
  0x24   :  { %875 = vmatmul.mubr.msk.f32.gmra.mrb[8].mxu0 %vm257_vm0, %v21_v46  ;;  %891 = vmatmul.mubr.msk.f32.gmra.mrb[8].mxu1 %vm257_vm0, %v37_v47  ;;  %v643_v46 = vld [vmem:[%s1705_s3 + $0x100] sm:$0xff] }
  0x25   :  { %448 = vmatprep.mubr.f32.mxu0 %v931_v3  ;;  %544 = vmatprep.mubr.f32.mxu1 %v931_v3 }
  0x26   :  { %174 = vperm.xlu1 %930, %v80_v52   ;;  %v644_v52 = vld [vmem:[%s1705_s3 + $0x108] sm:$0xff] }
  0x27   :  { %179 = vperm.xlu0 %929, %v81_v57  }
  0x28   :  { %876 = vmatmul.mubr.msk.f32.gmra.mrb[10].mxu0 %vm257_vm0, %v22_v50  ;;  %892 = vmatmul.mubr.msk.f32.gmra.mrb[10].mxu1 %vm257_vm0, %v38_v51  ;;  %v612_v50 = vld [vmem:[%s1705_s3 + $0x8] sm:$0xff] }
  0x29   :  { %454 = vmatprep.mubr.f32.mxu0 %v931_v3  ;;  %550 = vmatprep.mubr.f32.mxu1 %v931_v3 }
  0x2a   :  { %184 = vperm.xlu1 %930, %v82_v56  }
  0x2b   :  { %189 = vperm.xlu0 %929, %v83_v61   ;;  %v613_v61 = vld [vmem:[%s1705_s3 + $0x10] sm:$0xff] }
  0x2c   :  { %877 = vmatmul.mubr.msk.f32.gmra.mrb[12].mxu0 %vm257_vm0, %v23_v54  ;;  %893 = vmatmul.mubr.msk.f32.gmra.mrb[12].mxu1 %vm257_vm0, %v39_v55 }
  0x2d   :  { %460 = vmatprep.mubr.f32.mxu0 %v931_v3  ;;  %556 = vmatprep.mubr.f32.mxu1 %v931_v3 }
  0x2e   :  { %194 = vperm.xlu1 %930, %v84_v60  }
  0x2f   :  { %199 = vperm.xlu0 %929, %v85_v1  }
  0x30   :  { %878 = vmatmul.mubr.msk.f32.gmra.mrb[14].mxu0 %vm257_vm0, %v24_v58  ;;  %894 = vmatmul.mubr.msk.f32.gmra.mrb[14].mxu1 %vm257_vm0, %v40_v59 }
  0x31   :  { %466 = vmatprep.mubr.f32.mxu0 %v931_v3  ;;  %562 = vmatprep.mubr.f32.mxu1 %v931_v3 }
  0x32   :  { %204 = vperm.xlu1 %930, %v86_v0  }
  0x33   :  { %209 = vperm.xlu0 %929, %v87_v6   ;;  %v614_v6 = vld [vmem:[%s1705_s3 + $0x18] sm:$0xff] }
  0x34   :  { %879 = vmatmul.mubr.msk.f32.gmra.mrb[16].mxu0 %vm257_vm0, %v25_v62  ;;  %895 = vmatmul.mubr.msk.f32.gmra.mrb[16].mxu1 %vm257_vm0, %v41_v63  ;;  %v645_v63 = vld [vmem:[%s1705_s3 + $0x110] sm:$0xff] }
  0x35   :  { %472 = vmatprep.mubr.f32.mxu0 %v931_v3  ;;  %568 = vmatprep.mubr.f32.mxu1 %v931_v3 }
  0x36   :  { %214 = vperm.xlu1 %930, %v88_v5  }
  0x37   :  { %219 = vperm.xlu0 %929, %v89_v10  }
  0x38   :  { %880 = vmatmul.mubr.msk.f32.gmra.mrb[18].mxu0 %vm257_vm0, %v26_v2  ;;  %896 = vmatmul.mubr.msk.f32.gmra.mrb[18].mxu1 %vm257_vm0, %v42_v4 }
  0x39   :  { %478 = vmatprep.mubr.f32.mxu0 %v931_v3  ;;  %574 = vmatprep.mubr.f32.mxu1 %v931_v3 }
  0x3a   :  { %224 = vperm.xlu1 %930, %v90_v9  }
  0x3b   :  { %229 = vperm.xlu0 %929, %v91_v14  }
  0x3c   :  { %881 = vmatmul.mubr.msk.f32.gmra.mrb[20].mxu0 %vm257_vm0, %v27_v7  ;;  %897 = vmatmul.mubr.msk.f32.gmra.mrb[20].mxu1 %vm257_vm0, %v43_v8  ;;  %v646_v8 = vld [vmem:[%s1705_s3 + $0x118] sm:$0xff] }
  0x3d   :  { %484 = vmatprep.mubr.f32.mxu0 %v931_v3  ;;  %580 = vmatprep.mubr.f32.mxu1 %v931_v3 }
  0x3e   :  { %234 = vperm.xlu1 %930, %v92_v13  }
  0x3f   :  { %239 = vperm.xlu0 %929, %v93_v18  }
  0x40   :  { %882 = vmatmul.mubr.msk.f32.gmra.mrb[22].mxu0 %vm257_vm0, %v28_v11  ;;  %898 = vmatmul.mubr.msk.f32.gmra.mrb[22].mxu1 %vm257_vm0, %v44_v12 }
  0x41   :  { %490 = vmatprep.mubr.f32.mxu0 %v931_v3  ;;  %586 = vmatprep.mubr.f32.mxu1 %v931_v3 }
  0x42   :  { %244 = vperm.xlu1 %930, %v94_v17  }
  0x43   :  { %249 = vperm.xlu0 %929, %v95_v22  }
  0x44   :  { %883 = vmatmul.mubr.msk.f32.gmra.mrb[24].mxu0 %vm257_vm0, %v29_v15  ;;  %899 = vmatmul.mubr.msk.f32.gmra.mrb[24].mxu1 %vm257_vm0, %v45_v16 }
  0x45   :  { %496 = vmatprep.mubr.f32.mxu0 %v931_v3  ;;  %592 = vmatprep.mubr.f32.mxu1 %v931_v3 }
  0x46   :  { %254 = vperm.xlu1 %930, %v96_v21   ;;  %v647_v21 = vld [vmem:[%s1705_s3 + $0x120] sm:$0xff] }
  0x48   :  { %884 = vmatmul.mubr.msk.f32.gmra.mrb[26].mxu0 %vm257_vm0, %v30_v19  ;;  %900 = vmatmul.mubr.msk.f32.gmra.mrb[26].mxu1 %vm257_vm0, %v46_v20  ;;  %v615_v19 = vld [vmem:[%s1705_s3 + $0x20] sm:$0xff] }
  0x49   :  { %502 = vmatprep.mubr.f32.mxu0 %v931_v3  ;;  %598 = vmatprep.mubr.f32.mxu1 %v931_v3 }
  0x4c   :  { %885 = vmatmul.mubr.msk.f32.gmra.mrb[28].mxu0 %vm257_vm0, %v31_v23  ;;  %901 = vmatmul.mubr.msk.f32.gmra.mrb[28].mxu1 %vm257_vm0, %v47_v24 }
  0x4d   :  { %508 = vmatprep.mubr.f32.mxu0 %v931_v3  ;;  %604 = vmatprep.mubr.f32.mxu1 %v931_v3 }
  0x50   :  { %886 = vmatmul.mubr.msk.f32.gmra.mrb[30].mxu0 %vm257_vm0, %v32_v25  ;;  %902 = vmatmul.mubr.msk.f32.gmra.mrb[30].mxu1 %vm257_vm0, %v48_v26 }
  0x86   :  { %v100_v27 = vpop.permute.xlu0 %99 }
  0x87   :  { %v1262_v28 = vpop.permute.xlu1 %109 }
  0x8a   :  { %v105_v29 = vpop.permute.xlu0 %104 }
  0x8b   :  { %v1264_v30 = vpop.permute.xlu1 %114 }
  0x8e   :  { %v1266_v31 = vpop.permute.xlu0 %119 }
  0x8f   :  { %v1268_v3 = vpop.permute.xlu1 %124 }
  0x92   :  { %v1270_v32 = vpop.permute.xlu0 %129 }
  0x95   :  { %v1272_v33 = vpop.permute.xlu1 %134 }
  0x96   :  { %v1274_v34 = vpop.permute.xlu0 %139 }
  0x99   :  { %v1276_v35 = vpop.permute.xlu1 %144 }
  0x9a   :  { %v1278_v36 = vpop.permute.xlu0 %149 }
  0x9d   :  { %v1280_v37 = vpop.permute.xlu1 %154 }
  0x9e   :  { %v1282_v38 = vpop.permute.xlu0 %159 }
  0xa1   :  { %v1284_v39 = vpop.permute.xlu1 %164 }
  0xa2   :  { %v1286_v40 = vpop.permute.xlu0 %169 }
  0xa5   :  { %v1288_v41 = vpop.permute.xlu1 %174 }
  0xa6   :  { %v180_v42 = vpop.permute.xlu0 %179 }
  0xa9   :  { %v185_v55 = vpop.permute.xlu1 %184 }
  0xaa   :  { %v190_v13 = vpop.permute.xlu0 %189 }
  0xe7   :  { %v420_v43 = vpop.f32.mrb[0].mxu0  ;;  %v516_v45 = vpop.f32.mrb[0].mxu1 }
  0xe8   :  { %v421_v47 = vadd.f32 %v420_v43, %v100_v27  ;;  %v517_v48 = vadd.f32 %v516_v45, %v180_v42  ;;  %v422_v49 = vpop.f32.mrb[1].mxu0  ;;  %v518_v51 = vpop.f32.mrb[1].mxu1 }
  0xe9   :  { %v423_v53 = vadd.f32 %v422_v49, %v100_v27  ;;  %v519_v54 = vadd.f32 %v518_v51, %v180_v42  ;;  %v616_v27 = vld [vmem:[%s1705_s3 + $0x28] sm:$0xff] }
  0xea   :  { %v675_v56 = vadd.f32 %v611_v44, %v421_v47  ;;  %v707_v57 = vadd.f32 %v643_v46, %v517_v48  ;;  %v648_v42 = vld [vmem:[%s1705_s3 + $0x128] sm:$0xff]  ;;  %v195_v47 = vpop.permute.xlu1 %194 }
  0xeb   :  { %v676_v58 = vadd.f32 %v612_v50, %v423_v53  ;;  %v708_v59 = vadd.f32 %v644_v52, %v519_v54  ;;  %v426_v60 = vpop.f32.mrb[2].mxu0  ;;  %v522_v62 = vpop.f32.mrb[2].mxu1  ;;  %v617_v52 = vld [vmem:[%s1705_s3 + $0x30] sm:$0xff] }
  0xec   :  { %v739_v0 = vmax.f32 %v675_v56, 0.0  ;;  %v771_v1 = vmax.f32 %v707_v57, 0.0  ;;  %v427_v2 = vadd.f32 %v426_v60, %v105_v29  ;;  %v523_v4 = vadd.f32 %v522_v62, %v185_v55  ;;  %v428_v5 = vpop.f32.mrb[3].mxu0  ;;  %v524_v7 = vpop.f32.mrb[3].mxu1  ;;  %v649_v54 = vld [vmem:[%s1705_s3 + $0x130] sm:$0xff]  ;;  %v618_v60 = vld [vmem:[%s1705_s3 + $0x38] sm:$0xff] }
  0xed   :  { %v740_v9 = vmax.f32 %v676_v58, 0.0  ;;  %v772_v10 = vmax.f32 %v708_v59, 0.0  ;;  %v429_v11 = vadd.f32 %v428_v5, %v105_v29  ;;  %v525_v12 = vadd.f32 %v524_v7, %v185_v55  ;;  %v650_v62 = vld [vmem:[%s1705_s3 + $0x138] sm:$0xff] }
  0xee   :  { %803 = vst [vmem:[%s1706_s4] sm:$0xff] %v739_v0  ;;  %835 = vst [vmem:[%s1706_s4 + $0x100] sm:$0xff] %v771_v1  ;;  %v677_v14 = vadd.f32 %v613_v61, %v427_v2  ;;  %v709_v15 = vadd.f32 %v645_v63, %v523_v4  ;;  %v200_v4 = vpop.permute.xlu0 %199 }
  0xef   :  { %804 = vst [vmem:[%s1706_s4 + $0x8] sm:$0xff] %v740_v9  ;;  %836 = vst [vmem:[%s1706_s4 + $0x108] sm:$0xff] %v772_v10  ;;  %v678_v16 = vadd.f32 %v614_v6, %v429_v11  ;;  %v710_v17 = vadd.f32 %v646_v8, %v525_v12  ;;  %v432_v18 = vpop.f32.mrb[4].mxu0  ;;  %v528_v20 = vpop.f32.mrb[4].mxu1  ;;  %v619_v9 = vld [vmem:[%s1705_s3 + $0x40] sm:$0xff] }
  0xf0   :  { %v741_v22 = vmax.f32 %v677_v14, 0.0  ;;  %v773_v23 = vmax.f32 %v709_v15, 0.0  ;;  %v433_v24 = vadd.f32 %v432_v18, %v1262_v28  ;;  %v529_v25 = vadd.f32 %v528_v20, %v190_v13  ;;  %v434_v26 = vpop.f32.mrb[5].mxu0  ;;  %v530_v29 = vpop.f32.mrb[5].mxu1  ;;  %v651_v11 = vld [vmem:[%s1705_s3 + $0x140] sm:$0xff] }
  0xf1   :  { %v742_v43 = vmax.f32 %v678_v16, 0.0  ;;  %v774_v44 = vmax.f32 %v710_v17, 0.0  ;;  %v435_v45 = vadd.f32 %v434_v26, %v1262_v28  ;;  %v531_v46 = vadd.f32 %v530_v29, %v190_v13  ;;  %v620_v17 = vld [vmem:[%s1705_s3 + $0x48] sm:$0xff] }
  0xf2   :  { %805 = vst [vmem:[%s1706_s4 + $0x10] sm:$0xff] %v741_v22  ;;  %837 = vst [vmem:[%s1706_s4 + $0x110] sm:$0xff] %v773_v23  ;;  %v679_v48 = vadd.f32 %v615_v19, %v433_v24  ;;  %v711_v49 = vadd.f32 %v647_v21, %v529_v25  ;;  %v652_v19 = vld [vmem:[%s1705_s3 + $0x148] sm:$0xff]  ;;  %v205_v24 = vpop.permute.xlu1 %204 }
  0xf3   :  { %806 = vst [vmem:[%s1706_s4 + $0x18] sm:$0xff] %v742_v43  ;;  %838 = vst [vmem:[%s1706_s4 + $0x118] sm:$0xff] %v774_v44  ;;  %v680_v28 = vadd.f32 %v616_v27, %v435_v45  ;;  %v712_v50 = vadd.f32 %v648_v42, %v531_v46  ;;  %v438_v51 = vpop.f32.mrb[6].mxu0  ;;  %v534_v53 = vpop.f32.mrb[6].mxu1  ;;  %v621_v42 = vld [vmem:[%s1705_s3 + $0x50] sm:$0xff] }
  0xf4   :  { %v743_v55 = vmax.f32 %v679_v48, 0.0  ;;  %v775_v56 = vmax.f32 %v711_v49, 0.0  ;;  %v439_v57 = vadd.f32 %v438_v51, %v1264_v30  ;;  %v535_v58 = vadd.f32 %v534_v53, %v195_v47  ;;  %v440_v59 = vpop.f32.mrb[7].mxu0  ;;  %v536_v61 = vpop.f32.mrb[7].mxu1  ;;  %v653_v44 = vld [vmem:[%s1705_s3 + $0x150] sm:$0xff]  ;;  %v654_v51 = vld [vmem:[%s1705_s3 + $0x158] sm:$0xff] }
  0xf5   :  { %v744_v63 = vmax.f32 %v680_v28, 0.0  ;;  %v776_v0 = vmax.f32 %v712_v50, 0.0  ;;  %v441_v1 = vadd.f32 %v440_v59, %v1264_v30  ;;  %v537_v2 = vadd.f32 %v536_v61, %v195_v47  ;;  %v622_v28 = vld [vmem:[%s1705_s3 + $0x58] sm:$0xff]  ;;  %v623_v61 = vld [vmem:[%s1705_s3 + $0x60] sm:$0xff] }
  0xf6   :  { %807 = vst [vmem:[%s1706_s4 + $0x20] sm:$0xff] %v743_v55  ;;  %839 = vst [vmem:[%s1706_s4 + $0x120] sm:$0xff] %v775_v56  ;;  %v681_v5 = vadd.f32 %v617_v52, %v439_v57  ;;  %v713_v6 = vadd.f32 %v649_v54, %v535_v58  ;;  %v210_v56 = vpop.permute.xlu0 %209 }
  0xf7   :  { %808 = vst [vmem:[%s1706_s4 + $0x28] sm:$0xff] %v744_v63  ;;  %840 = vst [vmem:[%s1706_s4 + $0x128] sm:$0xff] %v776_v0  ;;  %v682_v30 = vadd.f32 %v618_v60, %v441_v1  ;;  %v714_v7 = vadd.f32 %v650_v62, %v537_v2  ;;  %v444_v8 = vpop.f32.mrb[8].mxu0  ;;  %v540_v10 = vpop.f32.mrb[8].mxu1  ;;  %v655_v63 = vld [vmem:[%s1705_s3 + $0x160] sm:$0xff] }
  0xf8   :  { %v745_v12 = vmax.f32 %v681_v5, 0.0  ;;  %v777_v13 = vmax.f32 %v713_v6, 0.0  ;;  %v445_v14 = vadd.f32 %v444_v8, %v1266_v31  ;;  %v541_v15 = vadd.f32 %v540_v10, %v200_v4  ;;  %v446_v16 = vpop.f32.mrb[9].mxu0  ;;  %v542_v18 = vpop.f32.mrb[9].mxu1  ;;  %v624_v6 = vld [vmem:[%s1705_s3 + $0x68] sm:$0xff] }
  0xf9   :  { %v746_v20 = vmax.f32 %v682_v30, 0.0  ;;  %v778_v21 = vmax.f32 %v714_v7, 0.0  ;;  %v447_v22 = vadd.f32 %v446_v16, %v1266_v31  ;;  %v543_v23 = vadd.f32 %v542_v18, %v200_v4  ;;  %v656_v7 = vld [vmem:[%s1705_s3 + $0x168] sm:$0xff] }
  0xfa   :  { %809 = vst [vmem:[%s1706_s4 + $0x30] sm:$0xff] %v745_v12  ;;  %841 = vst [vmem:[%s1706_s4 + $0x130] sm:$0xff] %v777_v13  ;;  %v683_v25 = vadd.f32 %v619_v9, %v445_v14  ;;  %v715_v26 = vadd.f32 %v651_v11, %v541_v15  ;;  %v215_v12 = vpop.permute.xlu1 %214 }
  0xfb   :  { %810 = vst [vmem:[%s1706_s4 + $0x38] sm:$0xff] %v746_v20  ;;  %842 = vst [vmem:[%s1706_s4 + $0x138] sm:$0xff] %v778_v21  ;;  %v684_v31 = vadd.f32 %v620_v17, %v447_v22  ;;  %v716_v27 = vadd.f32 %v652_v19, %v543_v23  ;;  %v450_v29 = vpop.f32.mrb[10].mxu0  ;;  %v546_v43 = vpop.f32.mrb[10].mxu1  ;;  %v625_v17 = vld [vmem:[%s1705_s3 + $0x70] sm:$0xff] }
  0xfc   :  { %v747_v45 = vmax.f32 %v683_v25, 0.0  ;;  %v779_v46 = vmax.f32 %v715_v26, 0.0  ;;  %v451_v47 = vadd.f32 %v450_v29, %v1268_v3  ;;  %v547_v48 = vadd.f32 %v546_v43, %v205_v24  ;;  %v452_v49 = vpop.f32.mrb[11].mxu0  ;;  %v548_v50 = vpop.f32.mrb[11].mxu1  ;;  %v657_v19 = vld [vmem:[%s1705_s3 + $0x170] sm:$0xff]  ;;  %v626_v25 = vld [vmem:[%s1705_s3 + $0x78] sm:$0xff] }
  0xfd   :  { %v748_v52 = vmax.f32 %v684_v31, 0.0  ;;  %v780_v53 = vmax.f32 %v716_v27, 0.0  ;;  %v453_v54 = vadd.f32 %v452_v49, %v1268_v3  ;;  %v549_v55 = vadd.f32 %v548_v50, %v205_v24  ;;  %v658_v31 = vld [vmem:[%s1705_s3 + $0x178] sm:$0xff]  ;;  %v627_v49 = vld [vmem:[%s1705_s3 + $0x80] sm:$0xff] }
  0xfe   :  { %811 = vst [vmem:[%s1706_s4 + $0x40] sm:$0xff] %v747_v45  ;;  %843 = vst [vmem:[%s1706_s4 + $0x140] sm:$0xff] %v779_v46  ;;  %v685_v57 = vadd.f32 %v621_v42, %v451_v47  ;;  %v717_v58 = vadd.f32 %v653_v44, %v547_v48  ;;  %v220_v44 = vpop.permute.xlu0 %219  ;;  %v659_v50 = vld [vmem:[%s1705_s3 + $0x180] sm:$0xff] }
  0xff   :  { %812 = vst [vmem:[%s1706_s4 + $0x48] sm:$0xff] %v748_v52  ;;  %844 = vst [vmem:[%s1706_s4 + $0x148] sm:$0xff] %v780_v53  ;;  %v686_v3 = vadd.f32 %v622_v28, %v453_v54  ;;  %v718_v59 = vadd.f32 %v654_v51, %v549_v55  ;;  %v456_v60 = vpop.f32.mrb[12].mxu0  ;;  %v552_v62 = vpop.f32.mrb[12].mxu1 }
 0x100   :  { %v749_v0 = vmax.f32 %v685_v57, 0.0  ;;  %v781_v1 = vmax.f32 %v717_v58, 0.0  ;;  %v457_v2 = vadd.f32 %v456_v60, %v1270_v32  ;;  %v553_v4 = vadd.f32 %v552_v62, %v210_v56  ;;  %v458_v5 = vpop.f32.mrb[13].mxu0  ;;  %v554_v30 = vpop.f32.mrb[13].mxu1  ;;  %v660_v58 = vld [vmem:[%s1705_s3 + $0x188] sm:$0xff] }
 0x101   :  { %v750_v8 = vmax.f32 %v686_v3, 0.0  ;;  %v782_v9 = vmax.f32 %v718_v59, 0.0  ;;  %v459_v10 = vadd.f32 %v458_v5, %v1270_v32  ;;  %v555_v11 = vadd.f32 %v554_v30, %v210_v56  ;;  %v628_v56 = vld [vmem:[%s1705_s3 + $0x88] sm:$0xff]  ;;  %v225_v62 = vpop.permute.xlu1 %224 }
 0x102   :  { %813 = vst [vmem:[%s1706_s4 + $0x50] sm:$0xff] %v749_v0  ;;  %845 = vst [vmem:[%s1706_s4 + $0x150] sm:$0xff] %v781_v1  ;;  %v687_v13 = vadd.f32 %v623_v61, %v457_v2  ;;  %v719_v14 = vadd.f32 %v655_v63, %v553_v4  ;;  %v629_v4 = vld [vmem:[%s1705_s3 + $0x90] sm:$0xff] }
 0x103   :  { %814 = vst [vmem:[%s1706_s4 + $0x58] sm:$0xff] %v750_v8  ;;  %846 = vst [vmem:[%s1706_s4 + $0x158] sm:$0xff] %v782_v9  ;;  %v688_v32 = vadd.f32 %v624_v6, %v459_v10  ;;  %v720_v15 = vadd.f32 %v656_v7, %v555_v11  ;;  %v462_v16 = vpop.f32.mrb[14].mxu0  ;;  %v558_v18 = vpop.f32.mrb[14].mxu1  ;;  %v661_v6 = vld [vmem:[%s1705_s3 + $0x190] sm:$0xff]  ;;  %v630_v11 = vld [vmem:[%s1705_s3 + $0x98] sm:$0xff] }
 0x104   :  { %v751_v20 = vmax.f32 %v687_v13, 0.0  ;;  %v783_v21 = vmax.f32 %v719_v14, 0.0  ;;  %v463_v22 = vadd.f32 %v462_v16, %v1272_v33  ;;  %v559_v23 = vadd.f32 %v558_v18, %v215_v12  ;;  %v464_v24 = vpop.f32.mrb[15].mxu0  ;;  %v560_v26 = vpop.f32.mrb[15].mxu1  ;;  %v662_v13 = vld [vmem:[%s1705_s3 + $0x198] sm:$0xff] }
 0x105   :  { %v752_v27 = vmax.f32 %v688_v32, 0.0  ;;  %v784_v29 = vmax.f32 %v720_v15, 0.0  ;;  %v465_v42 = vadd.f32 %v464_v24, %v1272_v33  ;;  %v561_v43 = vadd.f32 %v560_v26, %v215_v12  ;;  %v663_v24 = vld [vmem:[%s1705_s3 + $0x1a0] sm:$0xff] }
 0x106   :  { %815 = vst [vmem:[%s1706_s4 + $0x60] sm:$0xff] %v751_v20  ;;  %847 = vst [vmem:[%s1706_s4 + $0x160] sm:$0xff] %v783_v21  ;;  %v689_v45 = vadd.f32 %v625_v17, %v463_v22  ;;  %v721_v46 = vadd.f32 %v657_v19, %v559_v23  ;;  %v230_v17 = vpop.permute.xlu0 %229  ;;  %v631_v22 = vld [vmem:[%s1705_s3 + $0xa0] sm:$0xff] }
 0x107   :  { %816 = vst [vmem:[%s1706_s4 + $0x68] sm:$0xff] %v752_v27  ;;  %848 = vst [vmem:[%s1706_s4 + $0x168] sm:$0xff] %v784_v29  ;;  %v690_v33 = vadd.f32 %v626_v25, %v465_v42  ;;  %v722_v47 = vadd.f32 %v658_v31, %v561_v43  ;;  %v468_v48 = vpop.f32.mrb[16].mxu0  ;;  %v564_v28 = vpop.f32.mrb[16].mxu1  ;;  %v632_v42 = vld [vmem:[%s1705_s3 + $0xa8] sm:$0xff] }
 0x108   :  { %v753_v51 = vmax.f32 %v689_v45, 0.0  ;;  %v785_v52 = vmax.f32 %v721_v46, 0.0  ;;  %v469_v53 = vadd.f32 %v468_v48, %v1274_v34  ;;  %v565_v54 = vadd.f32 %v564_v28, %v220_v44  ;;  %v470_v55 = vpop.f32.mrb[17].mxu0  ;;  %v566_v57 = vpop.f32.mrb[17].mxu1 }
 0x109   :  { %v754_v3 = vmax.f32 %v690_v33, 0.0  ;;  %v786_v59 = vmax.f32 %v722_v47, 0.0  ;;  %v471_v60 = vadd.f32 %v470_v55, %v1274_v34  ;;  %v567_v61 = vadd.f32 %v566_v57, %v220_v44  ;;  %v664_v44 = vld [vmem:[%s1705_s3 + $0x1a8] sm:$0xff]  ;;  %v235_v48 = vpop.permute.xlu1 %234 }
 0x10a   :  { %817 = vst [vmem:[%s1706_s4 + $0x70] sm:$0xff] %v753_v51  ;;  %849 = vst [vmem:[%s1706_s4 + $0x170] sm:$0xff] %v785_v52  ;;  %v691_v63 = vadd.f32 %v627_v49, %v469_v53  ;;  %v723_v0 = vadd.f32 %v659_v50, %v565_v54  ;;  %v633_v52 = vld [vmem:[%s1705_s3 + $0xb0] sm:$0xff] }
 0x10b   :  { %818 = vst [vmem:[%s1706_s4 + $0x78] sm:$0xff] %v754_v3  ;;  %850 = vst [vmem:[%s1706_s4 + $0x178] sm:$0xff] %v786_v59  ;;  %v692_v34 = vadd.f32 %v628_v56, %v471_v60  ;;  %v724_v1 = vadd.f32 %v660_v58, %v567_v61  ;;  %v474_v2 = vpop.f32.mrb[18].mxu0  ;;  %v570_v5 = vpop.f32.mrb[18].mxu1  ;;  %v665_v54 = vld [vmem:[%s1705_s3 + $0x1b0] sm:$0xff]  ;;  %v634_v59 = vld [vmem:[%s1705_s3 + $0xb8] sm:$0xff] }
 0x10c   :  { %v755_v30 = vmax.f32 %v691_v63, 0.0  ;;  %v787_v7 = vmax.f32 %v723_v0, 0.0  ;;  %v475_v8 = vadd.f32 %v474_v2, %v1276_v35  ;;  %v571_v9 = vadd.f32 %v570_v5, %v225_v62  ;;  %v476_v10 = vpop.f32.mrb[19].mxu0  ;;  %v572_v12 = vpop.f32.mrb[19].mxu1  ;;  %v666_v61 = vld [vmem:[%s1705_s3 + $0x1b8] sm:$0xff] }
 0x10d   :  { %v756_v14 = vmax.f32 %v692_v34, 0.0  ;;  %v788_v32 = vmax.f32 %v724_v1, 0.0  ;;  %v477_v15 = vadd.f32 %v476_v10, %v1276_v35  ;;  %v573_v16 = vadd.f32 %v572_v12, %v225_v62  ;;  %v240_v1 = vpop.permute.xlu0 %239 }
 0x10e   :  { %819 = vst [vmem:[%s1706_s4 + $0x80] sm:$0xff] %v755_v30  ;;  %851 = vst [vmem:[%s1706_s4 + $0x180] sm:$0xff] %v787_v7  ;;  %v693_v18 = vadd.f32 %v629_v4, %v475_v8  ;;  %v725_v19 = vadd.f32 %v661_v6, %v571_v9  ;;  %v635_v30 = vld [vmem:[%s1705_s3 + $0xc0] sm:$0xff] }
 0x10f   :  { %820 = vst [vmem:[%s1706_s4 + $0x88] sm:$0xff] %v756_v14  ;;  %852 = vst [vmem:[%s1706_s4 + $0x188] sm:$0xff] %v788_v32  ;;  %v694_v35 = vadd.f32 %v630_v11, %v477_v15  ;;  %v726_v20 = vadd.f32 %v662_v13, %v573_v16  ;;  %v480_v21 = vpop.f32.mrb[20].mxu0  ;;  %v576_v23 = vpop.f32.mrb[20].mxu1  ;;  %v667_v8 = vld [vmem:[%s1705_s3 + $0x1c0] sm:$0xff]  ;;  %v636_v14 = vld [vmem:[%s1705_s3 + $0xc8] sm:$0xff] }
 0x110   :  { %v757_v25 = vmax.f32 %v693_v18, 0.0  ;;  %v789_v26 = vmax.f32 %v725_v19, 0.0  ;;  %v481_v31 = vadd.f32 %v480_v21, %v1278_v36  ;;  %v577_v27 = vadd.f32 %v576_v23, %v230_v17  ;;  %v482_v29 = vpop.f32.mrb[21].mxu0  ;;  %v578_v43 = vpop.f32.mrb[21].mxu1  ;;  %v668_v15 = vld [vmem:[%s1705_s3 + $0x1c8] sm:$0xff] }
 0x111   :  { %v758_v45 = vmax.f32 %v694_v35, 0.0  ;;  %v790_v46 = vmax.f32 %v726_v20, 0.0  ;;  %v483_v33 = vadd.f32 %v482_v29, %v1278_v36  ;;  %v579_v47 = vadd.f32 %v578_v43, %v230_v17  ;;  %v245_v35 = vpop.permute.xlu1 %244 }
 0x112   :  { %821 = vst [vmem:[%s1706_s4 + $0x90] sm:$0xff] %v757_v25  ;;  %853 = vst [vmem:[%s1706_s4 + $0x190] sm:$0xff] %v789_v26  ;;  %v695_v49 = vadd.f32 %v631_v22, %v481_v31  ;;  %v727_v28 = vadd.f32 %v663_v24, %v577_v27  ;;  %v637_v24 = vld [vmem:[%s1705_s3 + $0xd0] sm:$0xff] }
 0x113   :  { %822 = vst [vmem:[%s1706_s4 + $0x98] sm:$0xff] %v758_v45  ;;  %854 = vst [vmem:[%s1706_s4 + $0x198] sm:$0xff] %v790_v46  ;;  %v696_v36 = vadd.f32 %v632_v42, %v483_v33  ;;  %v728_v50 = vadd.f32 %v664_v44, %v579_v47  ;;  %v486_v51 = vpop.f32.mrb[22].mxu0  ;;  %v582_v53 = vpop.f32.mrb[22].mxu1  ;;  %v669_v26 = vld [vmem:[%s1705_s3 + $0x1d0] sm:$0xff]  ;;  %v638_v44 = vld [vmem:[%s1705_s3 + $0xd8] sm:$0xff] }
 0x114   :  { %v759_v55 = vmax.f32 %v695_v49, 0.0  ;;  %v791_v56 = vmax.f32 %v727_v28, 0.0  ;;  %v487_v57 = vadd.f32 %v486_v51, %v1280_v37  ;;  %v583_v58 = vadd.f32 %v582_v53, %v235_v48  ;;  %v488_v3 = vpop.f32.mrb[23].mxu0  ;;  %v584_v60 = vpop.f32.mrb[23].mxu1  ;;  %v670_v46 = vld [vmem:[%s1705_s3 + $0x1d8] sm:$0xff]  ;;  %v639_v53 = vld [vmem:[%s1705_s3 + $0xe0] sm:$0xff] }
 0x115   :  { %v760_v62 = vmax.f32 %v696_v36, 0.0  ;;  %v792_v63 = vmax.f32 %v728_v50, 0.0  ;;  %v489_v0 = vadd.f32 %v488_v3, %v1280_v37  ;;  %v585_v34 = vadd.f32 %v584_v60, %v235_v48  ;;  %v250_v28 = vpop.permute.xlu0 %249  ;;  %v640_v60 = vld [vmem:[%s1705_s3 + $0xe8] sm:$0xff] }
 0x116   :  { %823 = vst [vmem:[%s1706_s4 + $0xa0] sm:$0xff] %v759_v55  ;;  %855 = vst [vmem:[%s1706_s4 + $0x1a0] sm:$0xff] %v791_v56  ;;  %v697_v2 = vadd.f32 %v633_v52, %v487_v57  ;;  %v729_v4 = vadd.f32 %v665_v54, %v583_v58  ;;  %v671_v55 = vld [vmem:[%s1705_s3 + $0x1e0] sm:$0xff] }
 0x117   :  { %824 = vst [vmem:[%s1706_s4 + $0xa8] sm:$0xff] %v760_v62  ;;  %856 = vst [vmem:[%s1706_s4 + $0x1a8] sm:$0xff] %v792_v63  ;;  %v698_v37 = vadd.f32 %v634_v59, %v489_v0  ;;  %v730_v5 = vadd.f32 %v666_v61, %v585_v34  ;;  %v492_v6 = vpop.f32.mrb[24].mxu0  ;;  %v588_v7 = vpop.f32.mrb[24].mxu1  ;;  %v672_v62 = vld [vmem:[%s1705_s3 + $0x1e8] sm:$0xff] }
 0x118   :  { %v761_v9 = vmax.f32 %v697_v2, 0.0  ;;  %v793_v10 = vmax.f32 %v729_v4, 0.0  ;;  %v493_v11 = vadd.f32 %v492_v6, %v1282_v38  ;;  %v589_v12 = vadd.f32 %v588_v7, %v240_v1  ;;  %v494_v13 = vpop.f32.mrb[25].mxu0  ;;  %v590_v32 = vpop.f32.mrb[25].mxu1 }
 0x119   :  { %v762_v16 = vmax.f32 %v698_v37, 0.0  ;;  %v794_v17 = vmax.f32 %v730_v5, 0.0  ;;  %v495_v18 = vadd.f32 %v494_v13, %v1282_v38  ;;  %v591_v19 = vadd.f32 %v590_v32, %v240_v1  ;;  %v255_v2 = vpop.permute.xlu1 %254 }
 0x11a   :  { %825 = vst [vmem:[%s1706_s4 + $0xb0] sm:$0xff] %v761_v9  ;;  %857 = vst [vmem:[%s1706_s4 + $0x1b0] sm:$0xff] %v793_v10  ;;  %v699_v20 = vadd.f32 %v635_v30, %v493_v11  ;;  %v731_v21 = vadd.f32 %v667_v8, %v589_v12  ;;  %v641_v30 = vld [vmem:[%s1705_s3 + $0xf0] sm:$0xff] }
 0x11b   :  { %826 = vst [vmem:[%s1706_s4 + $0xb8] sm:$0xff] %v762_v16  ;;  %858 = vst [vmem:[%s1706_s4 + $0x1b8] sm:$0xff] %v794_v17  ;;  %v700_v38 = vadd.f32 %v636_v14, %v495_v18  ;;  %v732_v22 = vadd.f32 %v668_v15, %v591_v19  ;;  %v498_v23 = vpop.f32.mrb[26].mxu0  ;;  %v594_v25 = vpop.f32.mrb[26].mxu1  ;;  %v673_v8 = vld [vmem:[%s1705_s3 + $0x1f0] sm:$0xff]  ;;  %v642_v14 = vld [vmem:[%s1705_s3 + $0xf8] sm:$0xff] }
 0x11c   :  { %v763_v31 = vmax.f32 %v699_v20, 0.0  ;;  %v795_v27 = vmax.f32 %v731_v21, 0.0  ;;  %v499_v29 = vadd.f32 %v498_v23, %v1284_v39  ;;  %v595_v42 = vadd.f32 %v594_v25, %v245_v35  ;;  %v500_v43 = vpop.f32.mrb[27].mxu0  ;;  %v596_v45 = vpop.f32.mrb[27].mxu1  ;;  %v674_v15 = vld [vmem:[%s1705_s3 + $0x1f8] sm:$0xff] }
 0x11d   :  { %v764_v33 = vmax.f32 %v700_v38, 0.0  ;;  %v796_v47 = vmax.f32 %v732_v22, 0.0  ;;  %v501_v48 = vadd.f32 %v500_v43, %v1284_v39  ;;  %v597_v49 = vadd.f32 %v596_v45, %v245_v35 }
 0x11e   :  { %827 = vst [vmem:[%s1706_s4 + $0xc0] sm:$0xff] %v763_v31  ;;  %859 = vst [vmem:[%s1706_s4 + $0x1c0] sm:$0xff] %v795_v27  ;;  %v701_v36 = vadd.f32 %v637_v24, %v499_v29  ;;  %v733_v50 = vadd.f32 %v669_v26, %v595_v42 }
 0x11f   :  { %828 = vst [vmem:[%s1706_s4 + $0xc8] sm:$0xff] %v764_v33  ;;  %860 = vst [vmem:[%s1706_s4 + $0x1c8] sm:$0xff] %v796_v47  ;;  %v702_v39 = vadd.f32 %v638_v44, %v501_v48  ;;  %v734_v51 = vadd.f32 %v670_v46, %v597_v49  ;;  %v504_v52 = vpop.f32.mrb[28].mxu0  ;;  %v600_v54 = vpop.f32.mrb[28].mxu1 }
 0x120   :  { %v765_v56 = vmax.f32 %v701_v36, 0.0  ;;  %v797_v57 = vmax.f32 %v733_v50, 0.0  ;;  %v505_v58 = vadd.f32 %v504_v52, %v1286_v40  ;;  %v601_v3 = vadd.f32 %v600_v54, %v250_v28  ;;  %v506_v59 = vpop.f32.mrb[29].mxu0  ;;  %v602_v61 = vpop.f32.mrb[29].mxu1 }
 0x121   :  { %v766_v63 = vmax.f32 %v702_v39, 0.0  ;;  %v798_v0 = vmax.f32 %v734_v51, 0.0  ;;  %v507_v34 = vadd.f32 %v506_v59, %v1286_v40  ;;  %v603_v1 = vadd.f32 %v602_v61, %v250_v28 }
 0x122   :  { %829 = vst [vmem:[%s1706_s4 + $0xd0] sm:$0xff] %v765_v56  ;;  %861 = vst [vmem:[%s1706_s4 + $0x1d0] sm:$0xff] %v797_v57  ;;  %v703_v4 = vadd.f32 %v639_v53, %v505_v58  ;;  %v735_v37 = vadd.f32 %v671_v55, %v601_v3 }
 0x123   :  { %830 = vst [vmem:[%s1706_s4 + $0xd8] sm:$0xff] %v766_v63  ;;  %862 = vst [vmem:[%s1706_s4 + $0x1d8] sm:$0xff] %v798_v0  ;;  %v704_v40 = vadd.f32 %v640_v60, %v507_v34  ;;  %v736_v5 = vadd.f32 %v672_v62, %v603_v1  ;;  %v510_v6 = vpop.f32.mrb[30].mxu0  ;;  %v606_v7 = vpop.f32.mrb[30].mxu1 }
 0x124   :  { %v767_v9 = vmax.f32 %v703_v4, 0.0  ;;  %v799_v10 = vmax.f32 %v735_v37, 0.0  ;;  %v511_v11 = vadd.f32 %v510_v6, %v1288_v41  ;;  %v607_v12 = vadd.f32 %v606_v7, %v255_v2  ;;  %v512_v13 = vpop.f32.mrb[31].mxu0  ;;  %v608_v32 = vpop.f32.mrb[31].mxu1 }
 0x125   :  { %v768_v16 = vmax.f32 %v704_v40, 0.0  ;;  %v800_v17 = vmax.f32 %v736_v5, 0.0  ;;  %v513_v18 = vadd.f32 %v512_v13, %v1288_v41  ;;  %v609_v19 = vadd.f32 %v608_v32, %v255_v2 }
 0x126   :  { %831 = vst [vmem:[%s1706_s4 + $0xe0] sm:$0xff] %v767_v9  ;;  %863 = vst [vmem:[%s1706_s4 + $0x1e0] sm:$0xff] %v799_v10  ;;  %v705_v35 = vadd.f32 %v641_v30, %v511_v11  ;;  %v737_v20 = vadd.f32 %v673_v8, %v607_v12 }
 0x127   :  { %832 = vst [vmem:[%s1706_s4 + $0xe8] sm:$0xff] %v768_v16  ;;  %864 = vst [vmem:[%s1706_s4 + $0x1e8] sm:$0xff] %v800_v17  ;;  %v706_v41 = vadd.f32 %v642_v14, %v513_v18  ;;  %v738_v21 = vadd.f32 %v674_v15, %v609_v19 }
 0x128   :  { %v769_v38 = vmax.f32 %v705_v35, 0.0  ;;  %v801_v22 = vmax.f32 %v737_v20, 0.0 }
 0x129   :  { %v770_v23 = vmax.f32 %v706_v41, 0.0  ;;  %v802_v24 = vmax.f32 %v738_v21, 0.0 }
 0x12a   :  { %833 = vst [vmem:[%s1706_s4 + $0xf0] sm:$0xff] %v769_v38  ;;  %865 = vst [vmem:[%s1706_s4 + $0x1f0] sm:$0xff] %v801_v22 }
 0x12b   :  { %834 = vst [vmem:[%s1706_s4 + $0xf8] sm:$0xff] %v770_v23  ;;  %866 = vst [vmem:[%s1706_s4 + $0x1f8] sm:$0xff] %v802_v24 }

</bundles_post_ra>
